<compile_context>
chip_gen: v7x
topology: tpu7x:2x2x1
jax: 0.10.0
libtpu: 0.0.40
codegen_flags: <defaults>
</compile_context>

<pallas_src>
import functools
import math

import jax
import jax.numpy as jnp
from jax import lax
from jax.experimental import pallas as pl
from jax.experimental.pallas import tpu as pltpu  # noqa: F401  (TPU backend)

# ------------------------- synthetic small config -------------------------
VOCAB = 64
BLOCK_SIZE = 16
N_LAYER = 2
N_HEAD = 2
N_EMBD = 32
HEAD_DIM = N_EMBD // N_HEAD
NUM_PROTO = 6
N_P = 4
RADIUS = 2
TEMP = 1.0
LN_EPS = 1e-5        # F.layer_norm eps in the reference
NORM_EPS = 1e-12     # F.normalize eps
LANE = 128           # pad small output lane dims to 128 -> unmasked stores
NEG_BIG = -1e30      # finite mask value (avoids exp(-inf - -inf) NaN risk)


# ------------------------------ fused kernel -------------------------------
def _layernorm(x, w):
    mu = jnp.mean(x, axis=-1, keepdims=True)
    xc = x - mu
    var = jnp.mean(xc * xc, axis=-1, keepdims=True)
    return xc * lax.rsqrt(var + LN_EPS) * w


def ethos_fused_kernel(x_ref, mask_ref, ln1w_ref, wq_ref, wk_ref, wv_ref,
                       wproj_ref, ln2w_ref, wfc_ref, wfcp_ref, lnfw_ref,
                       proto_ref, lmw_ref, sim_ref, logits_ref,
                       *, n_layer, n_head):
    """Whole post-embedding forward: blocks -> ln_f -> proto sim + lm_head."""
    x = x_ref[...]                                   # (B*T, C) folded batch
    BT, C = x.shape
    hd = C // n_head
    scale = 1.0 / math.sqrt(hd)
    attn_bias = mask_ref[...]                        # (BT, BT): 0 or -1e30

    for l in range(n_layer):                         # unrolled (static)
        # ---------------- causal self-attention ----------------
        h = _layernorm(x, ln1w_ref[l])               # (BT, C)
        hb = jnp.broadcast_to(h, (n_head, BT, C))    # head-batched LHS
        q = jnp.einsum('htc,hcd->htd', hb, wq_ref[l],
                       preferred_element_type=jnp.float32)   # (H, BT, hd)
        k = jnp.einsum('htc,hcd->htd', hb, wk_ref[l],
                       preferred_element_type=jnp.float32)
        v = jnp.einsum('htc,hcd->htd', hb, wv_ref[l],
                       preferred_element_type=jnp.float32)

        att = jnp.einsum('hqd,hkd->hqk', q, k,
                         preferred_element_type=jnp.float32) * scale
        att = att + attn_bias                        # block-diag causal mask
        att = att - jnp.max(att, axis=-1, keepdims=True)
        e = jnp.exp(att)
        p = e * pl.reciprocal(jnp.sum(e, axis=-1, keepdims=True), approx=True)

        yh = jnp.einsum('hqk,hkd->hqd', p, v,
                        preferred_element_type=jnp.float32)  # (H, BT, hd)
        # fold the head concat into per-head proj matmuls summed over heads
        y = jnp.einsum('hqd,hdc->hqc', yh, wproj_ref[l],
                       preferred_element_type=jnp.float32)   # (H, BT, C)
        x = x + jnp.sum(y, axis=0)

        # ---------------- MLP (exact GELU, nn.GELU default) ----------------
        h2 = _layernorm(x, ln2w_ref[l])
        f = jnp.dot(h2, wfc_ref[l], preferred_element_type=jnp.float32)
        f = 0.5 * f * (1.0 + lax.erf(f * (1.0 / math.sqrt(2.0))))
        x = x + jnp.dot(f, wfcp_ref[l], preferred_element_type=jnp.float32)

    # ---------------- final LN + prototype similarity + lm_head ------------
    hf = _layernorm(x, lnfw_ref[...])                # ln_f output (== event feats)
    nrm = jnp.sqrt(jnp.sum(hf * hf, axis=-1, keepdims=True))
    xn = hf * pl.reciprocal(jnp.maximum(nrm, NORM_EPS), approx=True)
    # proto_ref / lmw_ref are zero-padded to 128 output lanes -> lane-dense stores
    sim_ref[...] = jnp.dot(xn, proto_ref[...],
                           preferred_element_type=jnp.float32)
    # weight-tied lm_head on ln_f output (bias scalar folded in outside:
    # (h + b) @ W == h @ W + b * colsum(W)); only last-token rows are used.
    logits_ref[...] = jnp.dot(hf, lmw_ref[...],
                              preferred_element_type=jnp.float32)


# -------------- greedy prototype matching (tiny tensors -> JAX glue) -------
def greedy_match(dist_all, patch_select):
    """Port of TimelinePrototypeMatcher.greedy_distance (timeline_mask == 1)."""
    B, P, T, n_p = dist_all.shape
    slots = jax.nn.sigmoid(patch_select * TEMP)           # (1, P, n_p)
    factor = jnp.sum(slots, axis=-1, keepdims=True) + 1e-10

    mask_act = jnp.ones((B, P, T), jnp.float32)
    mask_subpatch = jnp.ones((B, P, n_p), jnp.float32)
    mask_all = jnp.ones((B, P, T, n_p), jnp.float32)
    adjacent_mask = jnp.ones((B, P, T), jnp.float32)
    t_idx = jnp.arange(T)[None, None, :]
    sp_idx = jnp.arange(n_p)[None, None, :]

    subs, ids, vals = [], [], []
    for step in range(n_p):                               # static 4-step loop
        dm = dist_all + (1.0 - mask_all * adjacent_mask[..., None]) * -100000.0
        max_subs = jnp.max(dm, axis=2)                    # (B, P, n_p)
        max_subs_id = jnp.argmax(dm, axis=2)
        max_sub_act = jnp.max(max_subs, axis=-1)          # (B, P)
        max_sub_act_id = jnp.argmax(max_subs, axis=-1)
        max_event_id = jnp.take_along_axis(max_subs_id,
                                           max_sub_act_id[..., None], axis=2)
        neighbor = (jnp.abs(t_idx - max_event_id) <= RADIUS).astype(jnp.float32)
        if step > 0:                                      # direction == 'right'
            dirm = (t_idx > max_event_id).astype(jnp.float32)
            adjacent_mask = neighbor * dirm
        else:
            adjacent_mask = neighbor
        mask_act = jnp.where(t_idx == max_event_id, 0.0, mask_act)
        mask_subpatch = jnp.where(sp_idx == max_sub_act_id[..., None],
                                  0.0, mask_subpatch)
        mask_all = mask_all * mask_act[..., None] * mask_subpatch[:, :, None, :]
        subs.append(max_sub_act_id)
        ids.append(max_event_id[..., 0].astype(jnp.float32))
        vals.append(max_sub_act)

    subpatch_ids = jnp.stack(subs, axis=-1)
    values = jnp.stack(vals, axis=-1)
    indices = jnp.stack(ids, axis=-1)
    sub_indexes = jnp.argsort(subpatch_ids, axis=-1)
    values_reordered = jnp.take_along_axis(values, sub_indexes, axis=-1)
    indices_reordered = jnp.take_along_axis(indices,
                                            sub_indexes.astype(jnp.int32), axis=-1)
    values_slot = values_reordered * (slots * n_p / factor)
    max_activation_slots = jnp.sum(values_slot, axis=-1)
    min_distances = n_p - max_activation_slots
    return min_distances, indices_reordered


# ------------------------------ parameters ---------------------------------
def init_params(key):
    keys = iter(jax.random.split(key, 32))

    def nrm(shape, std=0.02):
        return jax.random.normal(next(keys), shape, jnp.float32) * std

    wte = nrm((VOCAB, N_EMBD))                      # tied with lm_head
    wpe = nrm((BLOCK_SIZE, N_EMBD))
    proj_std = 0.02 / math.sqrt(2 * N_LAYER)

    def split_heads(w):                             # (C, C) -> (H, C, hd)
        return w.reshape(N_EMBD, N_HEAD, HEAD_DIM).transpose(1, 0, 2)

    ln1_w, ln2_w = [], []
    w_q, w_k, w_v, w_proj_h, w_fc, w_fcp = [], [], [], [], [], []
    for _ in range(N_LAYER):
        w_qkv = nrm((N_EMBD, 3 * N_EMBD))           # c_attn weight (transposed)
        w_proj = nrm((N_EMBD, N_EMBD), proj_std)    # c_proj weight (transposed)
        w_q.append(split_heads(w_qkv[:, :N_EMBD]))
        w_k.append(split_heads(w_qkv[:, N_EMBD:2 * N_EMBD]))
        w_v.append(split_heads(w_qkv[:, 2 * N_EMBD:]))
        w_proj_h.append(w_proj.reshape(N_HEAD, HEAD_DIM, N_EMBD))
        w_fc.append(nrm((N_EMBD, 4 * N_EMBD)))
        w_fcp.append(nrm((4 * N_EMBD, N_EMBD), proj_std))
        ln1_w.append(jnp.ones((1, N_EMBD), jnp.float32))
        ln2_w.append(jnp.ones((1, N_EMBD), jnp.float32))

    # prototypes (F.normalize over embedding dim, done once: frozen forward)
    proto = jax.random.uniform(next(keys), (NUM_PROTO, N_EMBD, N_P), jnp.float32)
    pn = jnp.sqrt(jnp.sum(proto * proto, axis=1, keepdims=True))
    protn = proto / jnp.maximum(pn, NORM_EPS)
    proto_mat = jnp.transpose(protn, (1, 0, 2)).reshape(N_EMBD, NUM_PROTO * N_P)
    proto_pad = jnp.pad(proto_mat, ((0, 0), (0, LANE - NUM_PROTO * N_P)))

    # lm_head (tied): transpose + pad + column-sum once at init
    lm_w = wte.T                                    # (C, V)
    lm_w_pad = jnp.pad(lm_w, ((0, 0), (0, LANE - VOCAB)))
    lm_colsum = jnp.sum(lm_w, axis=0)               # (V,) for the bias fold

    return {
        "wte": wte, "wpe": wpe,
        "ln1_w": jnp.stack(ln1_w), "ln2_w": jnp.stack(ln2_w),
        "w_q": jnp.stack(w_q), "w_k": jnp.stack(w_k), "w_v": jnp.stack(w_v),
        "w_proj_h": jnp.stack(w_proj_h),
        "w_fc": jnp.stack(w_fc), "w_fc_proj": jnp.stack(w_fcp),
        "lnf_w": jnp.ones((1, N_EMBD), jnp.float32),
        "proto_pad": proto_pad,
        "lm_w_pad": lm_w_pad, "lm_colsum": lm_colsum,
        "patch_select": jnp.ones((1, NUM_PROTO, N_P), jnp.float32),
    }


# ------------------------------ full forward --------------------------------
def _ethos_forward_impl(idx, params):
    """idx: (B, T) int32 token ids. Returns (logits (B,1,V), None)."""
    B, T = idx.shape
    C = N_EMBD

    # embedding gather + positional add (glue, fused by XLA under jit)
    tok = params["wte"][idx]                            # (B, T, C)
    pos = params["wpe"][:T]                             # (T, C)
    x = (tok + pos[None]).reshape(B * T, C)             # fold batch into tile

    # block-diagonal causal additive mask (compile-time constant)
    r = jnp.arange(B * T)
    allowed = jnp.logical_and((r[:, None] // T) == (r[None, :] // T),
                              r[None, :] <= r[:, None])
    attn_bias = jnp.where(allowed, 0.0, NEG_BIG).astype(jnp.float32)

    sim_pad, logits_pad = pl.pallas_call(
        functools.partial(ethos_fused_kernel, n_layer=N_LAYER, n_head=N_HEAD),
        out_shape=(jax.ShapeDtypeStruct((B * T, LANE), jnp.float32),
                   jax.ShapeDtypeStruct((B * T, LANE), jnp.float32)),
    )(x, attn_bias,
      params["ln1_w"], params["w_q"], params["w_k"], params["w_v"],
      params["w_proj_h"], params["ln2_w"], params["w_fc"],
      params["w_fc_proj"], params["lnf_w"], params["proto_pad"],
      params["lm_w_pad"])

    # greedy prototype matching on (B, P, T, n_p) = (2, 6, 16, 4) — JAX glue
    sim = sim_pad[:, :NUM_PROTO * N_P].reshape(B, T, NUM_PROTO, N_P)
    dist_all = sim.transpose(0, 2, 1, 3)                # (B, P, T, n_p)
    min_distances, _ = greedy_match(dist_all, params["patch_select"])
    bias = jnp.mean(min_distances, axis=1)              # (B,)

    # lm_head was applied in-kernel to ln_f(x) without the bias; since the
    # bias is a per-batch scalar on every channel:
    #   (h + b) @ W == h @ W + b * colsum(W)
    raw_last = logits_pad.reshape(B, T, LANE)[:, -1, :VOCAB]   # (B, V)
    logits = raw_last + bias[:, None] * params["lm_colsum"][None, :]
    return logits[:, None, :], None


ethos_forward = jax.jit(_ethos_forward_impl)


if __name__ == "__main__":
    key = jax.random.PRNGKey(0)
    pkey, ikey = jax.random.split(key)
    params = init_params(pkey)

    B, T = 2, 16
    idx = jax.random.randint(ikey, (B, T), 0, VOCAB, dtype=jnp.int32)

    logits, loss = ethos_forward(idx, params)
    jax.block_until_ready(logits)
    assert logits.shape == (B, 1, VOCAB), logits.shape
    assert loss is None
    print("KERNEL_OK")
</pallas_src>

<mosaic_0001>
module attributes {stable_mosaic.version = 11 : i64} {
  func.func @ethos_fused_kernel(%arg0: memref<32x32xf32, #tpu.memory_space<vmem>>, %arg1: memref<32x32xf32, #tpu.memory_space<vmem>>, %arg2: memref<2x1x32xf32, #tpu.memory_space<vmem>>, %arg3: memref<2x2x32x16xf32, #tpu.memory_space<vmem>>, %arg4: memref<2x2x32x16xf32, #tpu.memory_space<vmem>>, %arg5: memref<2x2x32x16xf32, #tpu.memory_space<vmem>>, %arg6: memref<2x2x16x32xf32, #tpu.memory_space<vmem>>, %arg7: memref<2x1x32xf32, #tpu.memory_space<vmem>>, %arg8: memref<2x32x128xf32, #tpu.memory_space<vmem>>, %arg9: memref<2x128x32xf32, #tpu.memory_space<vmem>>, %arg10: memref<1x32xf32, #tpu.memory_space<vmem>>, %arg11: memref<32x128xf32, #tpu.memory_space<vmem>>, %arg12: memref<32x128xf32, #tpu.memory_space<vmem>>, %arg13: memref<32x128xf32, #tpu.memory_space<vmem>>, %arg14: memref<32x128xf32, #tpu.memory_space<vmem>>) attributes {dimension_semantics = [], scalar_prefetch = 0 : i64, scratch_operands = 0 : i64, tpu.core_type = #tpu.core_type<tc>} {
    %c0 = arith.constant 0 : index
    %c0_0 = arith.constant 0 : index
    %0 = vector.load %arg0[%c0, %c0_0] : memref<32x32xf32, #tpu.memory_space<vmem>>, vector<32x32xf32>
    %c0_1 = arith.constant 0 : index
    %c0_2 = arith.constant 0 : index
    %1 = vector.load %arg1[%c0_1, %c0_2] : memref<32x32xf32, #tpu.memory_space<vmem>>, vector<32x32xf32>
    %c0_3 = arith.constant 0 : index
    %c0_4 = arith.constant 0 : index
    %c0_5 = arith.constant 0 : index
    %2 = vector.load %arg2[%c0_3, %c0_4, %c0_5] : memref<2x1x32xf32, #tpu.memory_space<vmem>>, vector<1x1x32xf32>
    %3 = vector.shape_cast %2 : vector<1x1x32xf32> to vector<1x32xf32>
    %cst = arith.constant dense<0.000000e+00> : vector<32xf32>
    %4 = vector.multi_reduction <add>, %0, %cst [1] : vector<32x32xf32> to vector<32xf32>
    %5 = vector.shape_cast %4 : vector<32xf32> to vector<32x1xf32>
    %cst_6 = arith.constant 3.200000e+01 : f32
    %6 = vector.broadcast %cst_6 : f32 to vector<32x1xf32>
    %7 = arith.divf %5, %6 : vector<32x1xf32>
    %8 = vector.broadcast %7 : vector<32x1xf32> to vector<32x32xf32>
    %9 = arith.subf %0, %8 : vector<32x32xf32>
    %10 = arith.mulf %9, %9 : vector<32x32xf32>
    %cst_7 = arith.constant dense<0.000000e+00> : vector<32xf32>
    %11 = vector.multi_reduction <add>, %10, %cst_7 [1] : vector<32x32xf32> to vector<32xf32>
    %12 = vector.shape_cast %11 : vector<32xf32> to vector<32x1xf32>
    %cst_8 = arith.constant 3.200000e+01 : f32
    %13 = vector.broadcast %cst_8 : f32 to vector<32x1xf32>
    %14 = arith.divf %12, %13 : vector<32x1xf32>
    %cst_9 = arith.constant 9.99999974E-6 : f32
    %15 = vector.broadcast %cst_9 : f32 to vector<32x1xf32>
    %16 = arith.addf %14, %15 : vector<32x1xf32>
    %17 = math.rsqrt %16 : vector<32x1xf32>
    %18 = vector.broadcast %17 : vector<32x1xf32> to vector<32x32xf32>
    %19 = arith.mulf %9, %18 : vector<32x32xf32>
    %20 = vector.broadcast %3 : vector<1x32xf32> to vector<32x32xf32>
    %21 = arith.mulf %19, %20 : vector<32x32xf32>
    %22 = vector.shape_cast %21 : vector<32x32xf32> to vector<1x32x32xf32>
    %23 = vector.broadcast %22 : vector<1x32x32xf32> to vector<2x32x32xf32>
    %c0_10 = arith.constant 0 : index
    %c0_11 = arith.constant 0 : index
    %c0_12 = arith.constant 0 : index
    %c0_13 = arith.constant 0 : index
    %24 = vector.load %arg3[%c0_10, %c0_11, %c0_12, %c0_13] : memref<2x2x32x16xf32, #tpu.memory_space<vmem>>, vector<1x2x32x16xf32>
    %25 = vector.shape_cast %24 : vector<1x2x32x16xf32> to vector<2x32x16xf32>
    "tpu.trace_start"() <{level = 10 : i32, message = "htc,hcd->htd"}> : () -> ()
    %cst_14 = arith.constant dense<0.000000e+00> : vector<2x32x16xf32>
    %26 = tpu.matmul %23, %25, %cst_14 {dimension_numbers = #tpu.dot_dimension_numbers<[2], [1], [1], [2], [0, 0, 0, 1, 1, 2], [0], [0]>} : vector<2x32x32xf32>, vector<2x32x16xf32>, vector<2x32x16xf32> -> vector<2x32x16xf32>
    "tpu.trace_stop"() : () -> ()
    %c0_15 = arith.constant 0 : index
    %c0_16 = arith.constant 0 : index
    %c0_17 = arith.constant 0 : index
    %c0_18 = arith.constant 0 : index
    %27 = vector.load %arg4[%c0_15, %c0_16, %c0_17, %c0_18] : memref<2x2x32x16xf32, #tpu.memory_space<vmem>>, vector<1x2x32x16xf32>
    %28 = vector.shape_cast %27 : vector<1x2x32x16xf32> to vector<2x32x16xf32>
    "tpu.trace_start"() <{level = 10 : i32, message = "htc,hcd->htd"}> : () -> ()
    %cst_19 = arith.constant dense<0.000000e+00> : vector<2x32x16xf32>
    %29 = tpu.matmul %23, %28, %cst_19 {dimension_numbers = #tpu.dot_dimension_numbers<[2], [1], [1], [2], [0, 0, 0, 1, 1, 2], [0], [0]>} : vector<2x32x32xf32>, vector<2x32x16xf32>, vector<2x32x16xf32> -> vector<2x32x16xf32>
    "tpu.trace_stop"() : () -> ()
    %c0_20 = arith.constant 0 : index
    %c0_21 = arith.constant 0 : index
    %c0_22 = arith.constant 0 : index
    %c0_23 = arith.constant 0 : index
    %30 = vector.load %arg5[%c0_20, %c0_21, %c0_22, %c0_23] : memref<2x2x32x16xf32, #tpu.memory_space<vmem>>, vector<1x2x32x16xf32>
    %31 = vector.shape_cast %30 : vector<1x2x32x16xf32> to vector<2x32x16xf32>
    "tpu.trace_start"() <{level = 10 : i32, message = "htc,hcd->htd"}> : () -> ()
    %cst_24 = arith.constant dense<0.000000e+00> : vector<2x32x16xf32>
    %32 = tpu.matmul %23, %31, %cst_24 {dimension_numbers = #tpu.dot_dimension_numbers<[2], [1], [1], [2], [0, 0, 0, 1, 1, 2], [0], [0]>} : vector<2x32x32xf32>, vector<2x32x16xf32>, vector<2x32x16xf32> -> vector<2x32x16xf32>
    "tpu.trace_stop"() : () -> ()
    "tpu.trace_start"() <{level = 10 : i32, message = "hqd,hkd->hqk"}> : () -> ()
    %cst_25 = arith.constant dense<0.000000e+00> : vector<2x32x32xf32>
    %33 = tpu.matmul %26, %29, %cst_25 {dimension_numbers = #tpu.dot_dimension_numbers<[2], [2], [1], [1], [0, 0, 0, 1, 1, 1], [0], [0]>} : vector<2x32x16xf32>, vector<2x32x16xf32>, vector<2x32x32xf32> -> vector<2x32x32xf32>
    "tpu.trace_stop"() : () -> ()
    %cst_26 = arith.constant 2.500000e-01 : f32
    %34 = vector.broadcast %cst_26 : f32 to vector<2x32x32xf32>
    %35 = arith.mulf %33, %34 : vector<2x32x32xf32>
    %36 = vector.shape_cast %1 : vector<32x32xf32> to vector<1x32x32xf32>
    %37 = vector.broadcast %36 : vector<1x32x32xf32> to vector<2x32x32xf32>
    %38 = arith.addf %35, %37 : vector<2x32x32xf32>
    %cst_27 = arith.constant dense<0xFF800000> : vector<2x32xf32>
    %39 = vector.multi_reduction <maximumf>, %38, %cst_27 [2] : vector<2x32x32xf32> to vector<2x32xf32>
    %40 = vector.shape_cast %39 : vector<2x32xf32> to vector<2x32x1xf32>
    %41 = vector.broadcast %40 : vector<2x32x1xf32> to vector<2x32x32xf32>
    %42 = arith.subf %38, %41 : vector<2x32x32xf32>
    %43 = math.exp %42 : vector<2x32x32xf32>
    %cst_28 = arith.constant dense<0.000000e+00> : vector<2x32xf32>
    %44 = vector.multi_reduction <add>, %43, %cst_28 [2] : vector<2x32x32xf32> to vector<2x32xf32>
    %45 = vector.shape_cast %44 : vector<2x32xf32> to vector<2x32x1xf32>
    %46 = tpu.reciprocal %45 {approx = true} : vector<2x32x1xf32> -> vector<2x32x1xf32>
    %47 = vector.broadcast %46 : vector<2x32x1xf32> to vector<2x32x32xf32>
    %48 = arith.mulf %43, %47 : vector<2x32x32xf32>
    "tpu.trace_start"() <{level = 10 : i32, message = "hqk,hkd->hqd"}> : () -> ()
    %cst_29 = arith.constant dense<0.000000e+00> : vector<2x32x16xf32>
    %49 = tpu.matmul %48, %32, %cst_29 {dimension_numbers = #tpu.dot_dimension_numbers<[2], [1], [1], [2], [0, 0, 0, 1, 1, 2], [0], [0]>} : vector<2x32x32xf32>, vector<2x32x16xf32>, vector<2x32x16xf32> -> vector<2x32x16xf32>
    "tpu.trace_stop"() : () -> ()
    %c0_30 = arith.constant 0 : index
    %c0_31 = arith.constant 0 : index
    %c0_32 = arith.constant 0 : index
    %c0_33 = arith.constant 0 : index
    %50 = vector.load %arg6[%c0_30, %c0_31, %c0_32, %c0_33] : memref<2x2x16x32xf32, #tpu.memory_space<vmem>>, vector<1x2x16x32xf32>
    %51 = vector.shape_cast %50 : vector<1x2x16x32xf32> to vector<2x16x32xf32>
    "tpu.trace_start"() <{level = 10 : i32, message = "hqd,hdc->hqc"}> : () -> ()
    %cst_34 = arith.constant dense<0.000000e+00> : vector<2x32x32xf32>
    %52 = tpu.matmul %49, %51, %cst_34 {dimension_numbers = #tpu.dot_dimension_numbers<[2], [1], [1], [2], [0, 0, 0, 1, 1, 2], [0], [0]>} : vector<2x32x16xf32>, vector<2x16x32xf32>, vector<2x32x32xf32> -> vector<2x32x32xf32>
    "tpu.trace_stop"() : () -> ()
    %cst_35 = arith.constant dense<0.000000e+00> : vector<32x32xf32>
    %53 = vector.multi_reduction <add>, %52, %cst_35 [0] : vector<2x32x32xf32> to vector<32x32xf32>
    %54 = arith.addf %0, %53 : vector<32x32xf32>
    %c0_36 = arith.constant 0 : index
    %c0_37 = arith.constant 0 : index
    %c0_38 = arith.constant 0 : index
    %55 = vector.load %arg7[%c0_36, %c0_37, %c0_38] : memref<2x1x32xf32, #tpu.memory_space<vmem>>, vector<1x1x32xf32>
    %56 = vector.shape_cast %55 : vector<1x1x32xf32> to vector<1x32xf32>
    %cst_39 = arith.constant dense<0.000000e+00> : vector<32xf32>
    %57 = vector.multi_reduction <add>, %54, %cst_39 [1] : vector<32x32xf32> to vector<32xf32>
    %58 = vector.shape_cast %57 : vector<32xf32> to vector<32x1xf32>
    %cst_40 = arith.constant 3.200000e+01 : f32
    %59 = vector.broadcast %cst_40 : f32 to vector<32x1xf32>
    %60 = arith.divf %58, %59 : vector<32x1xf32>
    %61 = vector.broadcast %60 : vector<32x1xf32> to vector<32x32xf32>
    %62 = arith.subf %54, %61 : vector<32x32xf32>
    %63 = arith.mulf %62, %62 : vector<32x32xf32>
    %cst_41 = arith.constant dense<0.000000e+00> : vector<32xf32>
    %64 = vector.multi_reduction <add>, %63, %cst_41 [1] : vector<32x32xf32> to vector<32xf32>
    %65 = vector.shape_cast %64 : vector<32xf32> to vector<32x1xf32>
    %cst_42 = arith.constant 3.200000e+01 : f32
    %66 = vector.broadcast %cst_42 : f32 to vector<32x1xf32>
    %67 = arith.divf %65, %66 : vector<32x1xf32>
    %cst_43 = arith.constant 9.99999974E-6 : f32
    %68 = vector.broadcast %cst_43 : f32 to vector<32x1xf32>
    %69 = arith.addf %67, %68 : vector<32x1xf32>
    %70 = math.rsqrt %69 : vector<32x1xf32>
    %71 = vector.broadcast %70 : vector<32x1xf32> to vector<32x32xf32>
    %72 = arith.mulf %62, %71 : vector<32x32xf32>
    %73 = vector.broadcast %56 : vector<1x32xf32> to vector<32x32xf32>
    %74 = arith.mulf %72, %73 : vector<32x32xf32>
    %c0_44 = arith.constant 0 : index
    %c0_45 = arith.constant 0 : index
    %c0_46 = arith.constant 0 : index
    %75 = vector.load %arg8[%c0_44, %c0_45, %c0_46] : memref<2x32x128xf32, #tpu.memory_space<vmem>>, vector<1x32x128xf32>
    %76 = vector.shape_cast %75 : vector<1x32x128xf32> to vector<32x128xf32>
    %cst_47 = arith.constant dense<0.000000e+00> : vector<32x128xf32>
    %77 = tpu.matmul %74, %76, %cst_47 {dimension_numbers = #tpu.dot_dimension_numbers<[1], [0], [0], [1], [0, 0, 1, 1], [], []>} : vector<32x32xf32>, vector<32x128xf32>, vector<32x128xf32> -> vector<32x128xf32>
    %cst_48 = arith.constant 5.000000e-01 : f32
    %78 = vector.broadcast %cst_48 : f32 to vector<32x128xf32>
    %79 = arith.mulf %78, %77 : vector<32x128xf32>
    %cst_49 = arith.constant 0.707106769 : f32
    %80 = vector.broadcast %cst_49 : f32 to vector<32x128xf32>
    %81 = arith.mulf %77, %80 : vector<32x128xf32>
    %82 = math.erf %81 : vector<32x128xf32>
    %cst_50 = arith.constant 1.000000e+00 : f32
    %83 = vector.broadcast %cst_50 : f32 to vector<32x128xf32>
    %84 = arith.addf %83, %82 : vector<32x128xf32>
    %85 = arith.mulf %79, %84 : vector<32x128xf32>
    %c0_51 = arith.constant 0 : index
    %c0_52 = arith.constant 0 : index
    %c0_53 = arith.constant 0 : index
    %86 = vector.load %arg9[%c0_51, %c0_52, %c0_53] : memref<2x128x32xf32, #tpu.memory_space<vmem>>, vector<1x128x32xf32>
    %87 = vector.shape_cast %86 : vector<1x128x32xf32> to vector<128x32xf32>
    %cst_54 = arith.constant dense<0.000000e+00> : vector<32x32xf32>
    %88 = tpu.matmul %85, %87, %cst_54 {dimension_numbers = #tpu.dot_dimension_numbers<[1], [0], [0], [1], [0, 0, 1, 1], [], []>} : vector<32x128xf32>, vector<128x32xf32>, vector<32x32xf32> -> vector<32x32xf32>
    %89 = arith.addf %54, %88 : vector<32x32xf32>
    %c1 = arith.constant 1 : index
    %c0_55 = arith.constant 0 : index
    %c0_56 = arith.constant 0 : index
    %90 = vector.load %arg2[%c1, %c0_55, %c0_56] : memref<2x1x32xf32, #tpu.memory_space<vmem>>, vector<1x1x32xf32>
    %91 = vector.shape_cast %90 : vector<1x1x32xf32> to vector<1x32xf32>
    %cst_57 = arith.constant dense<0.000000e+00> : vector<32xf32>
    %92 = vector.multi_reduction <add>, %89, %cst_57 [1] : vector<32x32xf32> to vector<32xf32>
    %93 = vector.shape_cast %92 : vector<32xf32> to vector<32x1xf32>
    %cst_58 = arith.constant 3.200000e+01 : f32
    %94 = vector.broadcast %cst_58 : f32 to vector<32x1xf32>
    %95 = arith.divf %93, %94 : vector<32x1xf32>
    %96 = vector.broadcast %95 : vector<32x1xf32> to vector<32x32xf32>
    %97 = arith.subf %89, %96 : vector<32x32xf32>
    %98 = arith.mulf %97, %97 : vector<32x32xf32>
    %cst_59 = arith.constant dense<0.000000e+00> : vector<32xf32>
    %99 = vector.multi_reduction <add>, %98, %cst_59 [1] : vector<32x32xf32> to vector<32xf32>
    %100 = vector.shape_cast %99 : vector<32xf32> to vector<32x1xf32>
    %cst_60 = arith.constant 3.200000e+01 : f32
    %101 = vector.broadcast %cst_60 : f32 to vector<32x1xf32>
    %102 = arith.divf %100, %101 : vector<32x1xf32>
    %cst_61 = arith.constant 9.99999974E-6 : f32
    %103 = vector.broadcast %cst_61 : f32 to vector<32x1xf32>
    %104 = arith.addf %102, %103 : vector<32x1xf32>
    %105 = math.rsqrt %104 : vector<32x1xf32>
    %106 = vector.broadcast %105 : vector<32x1xf32> to vector<32x32xf32>
    %107 = arith.mulf %97, %106 : vector<32x32xf32>
    %108 = vector.broadcast %91 : vector<1x32xf32> to vector<32x32xf32>
    %109 = arith.mulf %107, %108 : vector<32x32xf32>
    %110 = vector.shape_cast %109 : vector<32x32xf32> to vector<1x32x32xf32>
    %111 = vector.broadcast %110 : vector<1x32x32xf32> to vector<2x32x32xf32>
    %c1_62 = arith.constant 1 : index
    %c0_63 = arith.constant 0 : index
    %c0_64 = arith.constant 0 : index
    %c0_65 = arith.constant 0 : index
    %112 = vector.load %arg3[%c1_62, %c0_63, %c0_64, %c0_65] : memref<2x2x32x16xf32, #tpu.memory_space<vmem>>, vector<1x2x32x16xf32>
    %113 = vector.shape_cast %112 : vector<1x2x32x16xf32> to vector<2x32x16xf32>
    "tpu.trace_start"() <{level = 10 : i32, message = "htc,hcd->htd"}> : () -> ()
    %cst_66 = arith.constant dense<0.000000e+00> : vector<2x32x16xf32>
    %114 = tpu.matmul %111, %113, %cst_66 {dimension_numbers = #tpu.dot_dimension_numbers<[2], [1], [1], [2], [0, 0, 0, 1, 1, 2], [0], [0]>} : vector<2x32x32xf32>, vector<2x32x16xf32>, vector<2x32x16xf32> -> vector<2x32x16xf32>
    "tpu.trace_stop"() : () -> ()
    %c1_67 = arith.constant 1 : index
    %c0_68 = arith.constant 0 : index
    %c0_69 = arith.constant 0 : index
    %c0_70 = arith.constant 0 : index
    %115 = vector.load %arg4[%c1_67, %c0_68, %c0_69, %c0_70] : memref<2x2x32x16xf32, #tpu.memory_space<vmem>>, vector<1x2x32x16xf32>
    %116 = vector.shape_cast %115 : vector<1x2x32x16xf32> to vector<2x32x16xf32>
    "tpu.trace_start"() <{level = 10 : i32, message = "htc,hcd->htd"}> : () -> ()
    %cst_71 = arith.constant dense<0.000000e+00> : vector<2x32x16xf32>
    %117 = tpu.matmul %111, %116, %cst_71 {dimension_numbers = #tpu.dot_dimension_numbers<[2], [1], [1], [2], [0, 0, 0, 1, 1, 2], [0], [0]>} : vector<2x32x32xf32>, vector<2x32x16xf32>, vector<2x32x16xf32> -> vector<2x32x16xf32>
    "tpu.trace_stop"() : () -> ()
    %c1_72 = arith.constant 1 : index
    %c0_73 = arith.constant 0 : index
    %c0_74 = arith.constant 0 : index
    %c0_75 = arith.constant 0 : index
    %118 = vector.load %arg5[%c1_72, %c0_73, %c0_74, %c0_75] : memref<2x2x32x16xf32, #tpu.memory_space<vmem>>, vector<1x2x32x16xf32>
    %119 = vector.shape_cast %118 : vector<1x2x32x16xf32> to vector<2x32x16xf32>
    "tpu.trace_start"() <{level = 10 : i32, message = "htc,hcd->htd"}> : () -> ()
    %cst_76 = arith.constant dense<0.000000e+00> : vector<2x32x16xf32>
    %120 = tpu.matmul %111, %119, %cst_76 {dimension_numbers = #tpu.dot_dimension_numbers<[2], [1], [1], [2], [0, 0, 0, 1, 1, 2], [0], [0]>} : vector<2x32x32xf32>, vector<2x32x16xf32>, vector<2x32x16xf32> -> vector<2x32x16xf32>
    "tpu.trace_stop"() : () -> ()
    "tpu.trace_start"() <{level = 10 : i32, message = "hqd,hkd->hqk"}> : () -> ()
    %cst_77 = arith.constant dense<0.000000e+00> : vector<2x32x32xf32>
    %121 = tpu.matmul %114, %117, %cst_77 {dimension_numbers = #tpu.dot_dimension_numbers<[2], [2], [1], [1], [0, 0, 0, 1, 1, 1], [0], [0]>} : vector<2x32x16xf32>, vector<2x32x16xf32>, vector<2x32x32xf32> -> vector<2x32x32xf32>
    "tpu.trace_stop"() : () -> ()
    %cst_78 = arith.constant 2.500000e-01 : f32
    %122 = vector.broadcast %cst_78 : f32 to vector<2x32x32xf32>
    %123 = arith.mulf %121, %122 : vector<2x32x32xf32>
    %124 = vector.shape_cast %1 : vector<32x32xf32> to vector<1x32x32xf32>
    %125 = vector.broadcast %124 : vector<1x32x32xf32> to vector<2x32x32xf32>
    %126 = arith.addf %123, %125 : vector<2x32x32xf32>
    %cst_79 = arith.constant dense<0xFF800000> : vector<2x32xf32>
    %127 = vector.multi_reduction <maximumf>, %126, %cst_79 [2] : vector<2x32x32xf32> to vector<2x32xf32>
    %128 = vector.shape_cast %127 : vector<2x32xf32> to vector<2x32x1xf32>
    %129 = vector.broadcast %128 : vector<2x32x1xf32> to vector<2x32x32xf32>
    %130 = arith.subf %126, %129 : vector<2x32x32xf32>
    %131 = math.exp %130 : vector<2x32x32xf32>
    %cst_80 = arith.constant dense<0.000000e+00> : vector<2x32xf32>
    %132 = vector.multi_reduction <add>, %131, %cst_80 [2] : vector<2x32x32xf32> to vector<2x32xf32>
    %133 = vector.shape_cast %132 : vector<2x32xf32> to vector<2x32x1xf32>
    %134 = tpu.reciprocal %133 {approx = true} : vector<2x32x1xf32> -> vector<2x32x1xf32>
    %135 = vector.broadcast %134 : vector<2x32x1xf32> to vector<2x32x32xf32>
    %136 = arith.mulf %131, %135 : vector<2x32x32xf32>
    "tpu.trace_start"() <{level = 10 : i32, message = "hqk,hkd->hqd"}> : () -> ()
    %cst_81 = arith.constant dense<0.000000e+00> : vector<2x32x16xf32>
    %137 = tpu.matmul %136, %120, %cst_81 {dimension_numbers = #tpu.dot_dimension_numbers<[2], [1], [1], [2], [0, 0, 0, 1, 1, 2], [0], [0]>} : vector<2x32x32xf32>, vector<2x32x16xf32>, vector<2x32x16xf32> -> vector<2x32x16xf32>
    "tpu.trace_stop"() : () -> ()
    %c1_82 = arith.constant 1 : index
    %c0_83 = arith.constant 0 : index
    %c0_84 = arith.constant 0 : index
    %c0_85 = arith.constant 0 : index
    %138 = vector.load %arg6[%c1_82, %c0_83, %c0_84, %c0_85] : memref<2x2x16x32xf32, #tpu.memory_space<vmem>>, vector<1x2x16x32xf32>
    %139 = vector.shape_cast %138 : vector<1x2x16x32xf32> to vector<2x16x32xf32>
    "tpu.trace_start"() <{level = 10 : i32, message = "hqd,hdc->hqc"}> : () -> ()
    %cst_86 = arith.constant dense<0.000000e+00> : vector<2x32x32xf32>
    %140 = tpu.matmul %137, %139, %cst_86 {dimension_numbers = #tpu.dot_dimension_numbers<[2], [1], [1], [2], [0, 0, 0, 1, 1, 2], [0], [0]>} : vector<2x32x16xf32>, vector<2x16x32xf32>, vector<2x32x32xf32> -> vector<2x32x32xf32>
    "tpu.trace_stop"() : () -> ()
    %cst_87 = arith.constant dense<0.000000e+00> : vector<32x32xf32>
    %141 = vector.multi_reduction <add>, %140, %cst_87 [0] : vector<2x32x32xf32> to vector<32x32xf32>
    %142 = arith.addf %89, %141 : vector<32x32xf32>
    %c1_88 = arith.constant 1 : index
    %c0_89 = arith.constant 0 : index
    %c0_90 = arith.constant 0 : index
    %143 = vector.load %arg7[%c1_88, %c0_89, %c0_90] : memref<2x1x32xf32, #tpu.memory_space<vmem>>, vector<1x1x32xf32>
    %144 = vector.shape_cast %143 : vector<1x1x32xf32> to vector<1x32xf32>
    %cst_91 = arith.constant dense<0.000000e+00> : vector<32xf32>
    %145 = vector.multi_reduction <add>, %142, %cst_91 [1] : vector<32x32xf32> to vector<32xf32>
    %146 = vector.shape_cast %145 : vector<32xf32> to vector<32x1xf32>
    %cst_92 = arith.constant 3.200000e+01 : f32
    %147 = vector.broadcast %cst_92 : f32 to vector<32x1xf32>
    %148 = arith.divf %146, %147 : vector<32x1xf32>
    %149 = vector.broadcast %148 : vector<32x1xf32> to vector<32x32xf32>
    %150 = arith.subf %142, %149 : vector<32x32xf32>
    %151 = arith.mulf %150, %150 : vector<32x32xf32>
    %cst_93 = arith.constant dense<0.000000e+00> : vector<32xf32>
    %152 = vector.multi_reduction <add>, %151, %cst_93 [1] : vector<32x32xf32> to vector<32xf32>
    %153 = vector.shape_cast %152 : vector<32xf32> to vector<32x1xf32>
    %cst_94 = arith.constant 3.200000e+01 : f32
    %154 = vector.broadcast %cst_94 : f32 to vector<32x1xf32>
    %155 = arith.divf %153, %154 : vector<32x1xf32>
    %cst_95 = arith.constant 9.99999974E-6 : f32
    %156 = vector.broadcast %cst_95 : f32 to vector<32x1xf32>
    %157 = arith.addf %155, %156 : vector<32x1xf32>
    %158 = math.rsqrt %157 : vector<32x1xf32>
    %159 = vector.broadcast %158 : vector<32x1xf32> to vector<32x32xf32>
    %160 = arith.mulf %150, %159 : vector<32x32xf32>
    %161 = vector.broadcast %144 : vector<1x32xf32> to vector<32x32xf32>
    %162 = arith.mulf %160, %161 : vector<32x32xf32>
    %c1_96 = arith.constant 1 : index
    %c0_97 = arith.constant 0 : index
    %c0_98 = arith.constant 0 : index
    %163 = vector.load %arg8[%c1_96, %c0_97, %c0_98] : memref<2x32x128xf32, #tpu.memory_space<vmem>>, vector<1x32x128xf32>
    %164 = vector.shape_cast %163 : vector<1x32x128xf32> to vector<32x128xf32>
    %cst_99 = arith.constant dense<0.000000e+00> : vector<32x128xf32>
    %165 = tpu.matmul %162, %164, %cst_99 {dimension_numbers = #tpu.dot_dimension_numbers<[1], [0], [0], [1], [0, 0, 1, 1], [], []>} : vector<32x32xf32>, vector<32x128xf32>, vector<32x128xf32> -> vector<32x128xf32>
    %cst_100 = arith.constant 5.000000e-01 : f32
    %166 = vector.broadcast %cst_100 : f32 to vector<32x128xf32>
    %167 = arith.mulf %166, %165 : vector<32x128xf32>
    %cst_101 = arith.constant 0.707106769 : f32
    %168 = vector.broadcast %cst_101 : f32 to vector<32x128xf32>
    %169 = arith.mulf %165, %168 : vector<32x128xf32>
    %170 = math.erf %169 : vector<32x128xf32>
    %cst_102 = arith.constant 1.000000e+00 : f32
    %171 = vector.broadcast %cst_102 : f32 to vector<32x128xf32>
    %172 = arith.addf %171, %170 : vector<32x128xf32>
    %173 = arith.mulf %167, %172 : vector<32x128xf32>
    %c1_103 = arith.constant 1 : index
    %c0_104 = arith.constant 0 : index
    %c0_105 = arith.constant 0 : index
    %174 = vector.load %arg9[%c1_103, %c0_104, %c0_105] : memref<2x128x32xf32, #tpu.memory_space<vmem>>, vector<1x128x32xf32>
    %175 = vector.shape_cast %174 : vector<1x128x32xf32> to vector<128x32xf32>
    %cst_106 = arith.constant dense<0.000000e+00> : vector<32x32xf32>
    %176 = tpu.matmul %173, %175, %cst_106 {dimension_numbers = #tpu.dot_dimension_numbers<[1], [0], [0], [1], [0, 0, 1, 1], [], []>} : vector<32x128xf32>, vector<128x32xf32>, vector<32x32xf32> -> vector<32x32xf32>
    %177 = arith.addf %142, %176 : vector<32x32xf32>
    %c0_107 = arith.constant 0 : index
    %c0_108 = arith.constant 0 : index
    %178 = vector.load %arg10[%c0_107, %c0_108] : memref<1x32xf32, #tpu.memory_space<vmem>>, vector<1x32xf32>
    %cst_109 = arith.constant dense<0.000000e+00> : vector<32xf32>
    %179 = vector.multi_reduction <add>, %177, %cst_109 [1] : vector<32x32xf32> to vector<32xf32>
    %180 = vector.shape_cast %179 : vector<32xf32> to vector<32x1xf32>
    %cst_110 = arith.constant 3.200000e+01 : f32
    %181 = vector.broadcast %cst_110 : f32 to vector<32x1xf32>
    %182 = arith.divf %180, %181 : vector<32x1xf32>
    %183 = vector.broadcast %182 : vector<32x1xf32> to vector<32x32xf32>
    %184 = arith.subf %177, %183 : vector<32x32xf32>
    %185 = arith.mulf %184, %184 : vector<32x32xf32>
    %cst_111 = arith.constant dense<0.000000e+00> : vector<32xf32>
    %186 = vector.multi_reduction <add>, %185, %cst_111 [1] : vector<32x32xf32> to vector<32xf32>
    %187 = vector.shape_cast %186 : vector<32xf32> to vector<32x1xf32>
    %cst_112 = arith.constant 3.200000e+01 : f32
    %188 = vector.broadcast %cst_112 : f32 to vector<32x1xf32>
    %189 = arith.divf %187, %188 : vector<32x1xf32>
    %cst_113 = arith.constant 9.99999974E-6 : f32
    %190 = vector.broadcast %cst_113 : f32 to vector<32x1xf32>
    %191 = arith.addf %189, %190 : vector<32x1xf32>
    %192 = math.rsqrt %191 : vector<32x1xf32>
    %193 = vector.broadcast %192 : vector<32x1xf32> to vector<32x32xf32>
    %194 = arith.mulf %184, %193 : vector<32x32xf32>
    %195 = vector.broadcast %178 : vector<1x32xf32> to vector<32x32xf32>
    %196 = arith.mulf %194, %195 : vector<32x32xf32>
    %197 = arith.mulf %196, %196 : vector<32x32xf32>
    %cst_114 = arith.constant dense<0.000000e+00> : vector<32xf32>
    %198 = vector.multi_reduction <add>, %197, %cst_114 [1] : vector<32x32xf32> to vector<32xf32>
    %199 = vector.shape_cast %198 : vector<32xf32> to vector<32x1xf32>
    %200 = math.sqrt %199 : vector<32x1xf32>
    %cst_115 = arith.constant 9.99999996E-13 : f32
    %201 = vector.broadcast %cst_115 : f32 to vector<32x1xf32>
    %202 = arith.maximumf %200, %201 : vector<32x1xf32>
    %203 = tpu.reciprocal %202 {approx = true} : vector<32x1xf32> -> vector<32x1xf32>
    %204 = vector.broadcast %203 : vector<32x1xf32> to vector<32x32xf32>
    %205 = arith.mulf %196, %204 : vector<32x32xf32>
    %c0_116 = arith.constant 0 : index
    %c0_117 = arith.constant 0 : index
    %206 = vector.load %arg11[%c0_116, %c0_117] : memref<32x128xf32, #tpu.memory_space<vmem>>, vector<32x128xf32>
    %cst_118 = arith.constant dense<0.000000e+00> : vector<32x128xf32>
    %207 = tpu.matmul %205, %206, %cst_118 {dimension_numbers = #tpu.dot_dimension_numbers<[1], [0], [0], [1], [0, 0, 1, 1], [], []>} : vector<32x32xf32>, vector<32x128xf32>, vector<32x128xf32> -> vector<32x128xf32>
    %c0_119 = arith.constant 0 : index
    %c0_120 = arith.constant 0 : index
    %208 = vector.load %arg13[%c0_119, %c0_120] : memref<32x128xf32, #tpu.memory_space<vmem>>, vector<32x128xf32>
    tpu.vector_store %arg13[%c0_119, %c0_120], %207 {strides = array<i32>} : memref<32x128xf32, #tpu.memory_space<vmem>>, vector<32x128xf32>,
    %c0_121 = arith.constant 0 : index
    %c0_122 = arith.constant 0 : index
    %209 = vector.load %arg12[%c0_121, %c0_122] : memref<32x128xf32, #tpu.memory_space<vmem>>, vector<32x128xf32>
    %cst_123 = arith.constant dense<0.000000e+00> : vector<32x128xf32>
    %210 = tpu.matmul %196, %209, %cst_123 {dimension_numbers = #tpu.dot_dimension_numbers<[1], [0], [0], [1], [0, 0, 1, 1], [], []>} : vector<32x32xf32>, vector<32x128xf32>, vector<32x128xf32> -> vector<32x128xf32>
    %c0_124 = arith.constant 0 : index
    %c0_125 = arith.constant 0 : index
    %211 = vector.load %arg14[%c0_124, %c0_125] : memref<32x128xf32, #tpu.memory_space<vmem>>, vector<32x128xf32>
    tpu.vector_store %arg14[%c0_124, %c0_125], %210 {strides = array<i32>} : memref<32x128xf32, #tpu.memory_space<vmem>>, vector<32x128xf32>,
    return
  }
}

</mosaic_0001>

<bundles_post_ra>
// kernel: _ethos_forward_impl.1
= control target key start
LH: loop header
LB: loop body
LE: loop exit
PB: predicated region body
PF: predicated region fallthrough
CT: control target
= control target key end

     0   :  { %vm55_vm0 = vcmask 261120   ;;  %vm665_vm1 = vcmask 130048   ;;  %s5855_s0 = inlined_call_operand.vmem [shape: f32[32,32], index: 0, kind: input, shape index: {}]   ;;  %s5856_s3 = inlined_call_operand.vmem [shape: f32[2,2,32,16], index: 3, kind: input, shape index: {}]   ;;  %s5857_s4 = inlined_call_operand.vmem [shape: f32[2,2,32,16], index: 4, kind: input, shape index: {}]   ;;  %s5858_s5 = inlined_call_operand.vmem [shape: f32[2,2,32,16], index: 5, kind: input, shape index: {}]   ;;  %s5859_s2 = inlined_call_operand.vmem [shape: f32[2,1,32], index: 2, kind: input, shape index: {}]   ;;  %s5860_s1 = inlined_call_operand.vmem [shape: f32[32,32], index: 1, kind: input, shape index: {}]   ;;  %s5861_s6 = inlined_call_operand.vmem [shape: f32[2,2,16,32], index: 6, kind: input, shape index: {}]   ;;  %s5862_s8 = inlined_call_operand.vmem [shape: f32[2,32,128], index: 8, kind: input, shape index: {}]   ;;  %s5863_s9 = inlined_call_operand.vmem [shape: f32[2,128,32], index: 9, kind: input, shape index: {}]   ;;  %s5864_s7 = inlined_call_operand.vmem [shape: f32[2,1,32], index: 7, kind: input, shape index: {}]   ;;  %s5865_s10 = inlined_call_operand.vmem [shape: f32[1,32], index: 10, kind: input, shape index: {}]   ;;  %s5866_s11 = inlined_call_operand.vmem [shape: f32[32,128], index: 11, kind: input, shape index: {}]   ;;  %s5867_s12 = inlined_call_operand.vmem [shape: f32[32,128], index: 12, kind: input, shape index: {}]   ;;  %s5868_s13 = inlined_call_operand.vmem [shape: f32[32,128], index: 13, kind: output, shape index: {0}]   ;;  %s5869_s14 = inlined_call_operand.vmem [shape: f32[32,128], index: 14, kind: output, shape index: {1}]  }
   0x1   :  { %v5055_v0 = vld [vmem:[%s5855_s0] sm:$0xff]  ;;  %v5060_v1 = vld [vmem:[%s5855_s0 + $0x10] sm:$0xff]  ;;  %v5065_v2 = vld [vmem:[%s5855_s0 + $0x8] sm:$0xff] }
   0x2   :  { %v56_v3 = vsel %vm55_vm0, %v5055_v0, 0.0  ;;  %v62_v4 = vsel %vm55_vm0, %v5060_v1, 0.0  ;;  %v5074_v5 = vld [vmem:[%s5855_s0 + $0x18] sm:$0xff]  ;;  %v59_v6 = vsel %vm55_vm0, %v5065_v2, 0.0  ;;  %v119_v28 = vld [vmem:[%s5856_s3] sm:$0xff]  ;;  %v120_v29 = vld [vmem:[%s5856_s3 + $0x8] sm:$0xff] }
   0x3   :  { %57 = vadd.xlane.f32.xlu0 %v56_v3  ;;  %63 = vadd.xlane.f32.xlu1 %v62_v4  ;;  %v65_v7 = vsel %vm55_vm0, %v5074_v5, 0.0  ;;  %v309_v30 = vld [vmem:[%s5857_s4] sm:$0xff]  ;;  %v4549_v31 = vpack.c.bf16 %v120_v29, %v119_v28  ;;  %v310_v32 = vld [vmem:[%s5857_s4 + $0x8] sm:$0xff]  ;;  %v121_v34 = vld [vmem:[%s5856_s3 + $0x10] sm:$0xff] }
   0x4   :  { %v4565_v33 = vpack.c.bf16 %v310_v32, %v309_v30  ;;  %v122_v35 = vld [vmem:[%s5856_s3 + $0x18] sm:$0xff]  ;;  %v311_v36 = vld [vmem:[%s5857_s4 + $0x10] sm:$0xff]  ;;  %v123_v40 = vld [vmem:[%s5856_s3 + $0x20] sm:$0xff] }
   0x5   :  { %4550 = vmatprep.subr.bf16.mxu1 %v4549_v31  ;;  %v4553_v37 = vpack.c.bf16 %v122_v35, %v121_v34  ;;  %v312_v38 = vld [vmem:[%s5857_s4 + $0x18] sm:$0xff]  ;;  %v124_v41 = vld [vmem:[%s5856_s3 + $0x28] sm:$0xff]  ;;  %v487_v42 = vld [vmem:[%s5858_s5] sm:$0xff] }
   0x6   :  { %4552 = vmatpush3.bf16.msra.mxu1 %v4549_v31  ;;  %4566 = vmatprep.subr.bf16.mxu0 %v4565_v33  ;;  %v4569_v39 = vpack.c.bf16 %v312_v38, %v311_v36  ;;  %v4557_v43 = vpack.c.bf16 %v124_v41, %v123_v40  ;;  %v488_v44 = vld [vmem:[%s5858_s5 + $0x8] sm:$0xff]  ;;  %v3658_v59 = vld [vmem:[%s5859_s2] ss:$0 sm:$0xff]  ;;  %v125_v63 = vld [vmem:[%s5856_s3 + $0x30] sm:$0xff] }
   0x7   :  { %60 = vadd.xlane.f32.xlu0 %v59_v6  ;;  %66 = vadd.xlane.f32.xlu1 %v65_v7  ;;  %v4581_v45 = vpack.c.bf16 %v488_v44, %v487_v42  ;;  %v126_v6 = vld [vmem:[%s5856_s3 + $0x38] sm:$0xff]  ;;  %v489_v7 = vld [vmem:[%s5858_s5 + $0x10] sm:$0xff]  ;;  %vm5209_vm2 = vmpackc.low %vm665_vm1, %vm665_vm1 }
   0x8   :  { %4568 = vmatpush3.bf16.msra.mxu0 %v4565_v33  ;;  %4554 = vmatprep.subr.bf16.mxu1 %v4553_v37 }
   0x9   :  { %4570 = vmatprep.subr.bf16.mxu0 %v4569_v39 }
   0xa   :  { %4556 = vmatpush3.bf16.msra.mxu1 %v4553_v37 }
   0xb   :  { %4558 = vmatprep.subr.bf16.mxu1 %v4557_v43 }
   0xc   :  { %4572 = vmatpush3.bf16.msra.mxu0 %v4569_v39 }
   0xd   :  { %4582 = vmatprep.subr.bf16.mxu0 %v4581_v45 }
  0x90   :  { %v58_v8 = vpop.xlane.xlu0 %57  ;;  %v64_v9 = vpop.xlane.xlu1 %63 }
  0x91   :  { %v69_v10 = vmul.f32 0.03125, %v58_v8  ;;  %v71_v11 = vmul.f32 0.03125, %v64_v9  ;;  %v490_v8 = vld [vmem:[%s5858_s5 + $0x18] sm:$0xff] }
  0x93   :  { %v5081_v12 = vsub.f32 %v5055_v0, %v69_v10  ;;  %v5084_v13 = vsub.f32 %v5060_v1, %v71_v11 }
  0x94   :  { %v61_v14 = vpop.xlane.xlu0 %60  ;;  %v67_v15 = vpop.xlane.xlu1 %66 }
  0x95   :  { %v70_v16 = vmul.f32 0.03125, %v61_v14  ;;  %v72_v17 = vmul.f32 0.03125, %v67_v15  ;;  %v77_v18 = vmul.f32 %v5081_v12, %v5081_v12  ;;  %v79_v19 = vmul.f32 %v5084_v13, %v5084_v13 }
  0x96   :  { %v4561_v14 = vpack.c.bf16 %v126_v6, %v125_v63  ;;  %v4585_v15 = vpack.c.bf16 %v490_v8, %v489_v7  ;;  %v51_v63 = vld [vmem:[%s5860_s1 + $0x8] sm:$0xff]  ;;  %v50_v7 = vld [vmem:[%s5860_s1] sm:$0xff] }
  0x97   :  { %v5091_v20 = vsub.f32 %v5065_v2, %v70_v16  ;;  %v5094_v21 = vsub.f32 %v5074_v5, %v72_v17  ;;  %v81_v22 = vsel %vm55_vm0, %v77_v18, 0.0  ;;  %v87_v23 = vsel %vm55_vm0, %v79_v19, 0.0  ;;  %v313_v17 = vld [vmem:[%s5857_s4 + $0x20] sm:$0xff]  ;;  %v314_v18 = vld [vmem:[%s5857_s4 + $0x28] sm:$0xff] }
  0x98   :  { %82 = vadd.xlane.f32.xlu0 %v81_v22  ;;  %v4573_v19 = vpack.c.bf16 %v314_v18, %v313_v17 }
  0x99   :  { %v78_v24 = vmul.f32 %v5091_v20, %v5091_v20  ;;  %v80_v25 = vmul.f32 %v5094_v21, %v5094_v21 }
  0x9b   :  { %v84_v26 = vsel %vm55_vm0, %v78_v24, 0.0  ;;  %v90_v27 = vsel %vm55_vm0, %v80_v25, 0.0  ;;  %v492_v24 = vld [vmem:[%s5858_s5 + $0x28] sm:$0xff] }
  0x9c   :  { %88 = vadd.xlane.f32.xlu0 %v87_v23  ;;  %85 = vadd.xlane.f32.xlu1 %v84_v26  ;;  %v491_v23 = vld [vmem:[%s5858_s5 + $0x20] sm:$0xff]  ;;  %v493_v26 = vld [vmem:[%s5858_s5 + $0x30] sm:$0xff] }
  0x9d   :  { %v4589_v25 = vpack.c.bf16 %v492_v24, %v491_v23 }
  0xa0   :  { %91 = vadd.xlane.f32.xlu1 %v90_v27  ;;  %v494_v27 = vld [vmem:[%s5858_s5 + $0x38] sm:$0xff] }
  0xa1   :  { %v4593_v28 = vpack.c.bf16 %v494_v27, %v493_v26 }
 0x125   :  { %v83_v46 = vpop.xlane.xlu0 %82 }
 0x126   :  { %v93_v47 = vmul.f32 0.03125, %v83_v46 }
 0x128   :  { %v97_v48 = vadd.f32 1e-05, %v93_v47 }
 0x129   :  { %v86_v49 = vpop.xlane.xlu1 %85  ;;  %v89_v50 = vpop.xlane.xlu0 %88 }
 0x12a   :  { %4837 = vrsqrt.f32 %v97_v48  ;;  %v94_v51 = vmul.f32 0.03125, %v86_v49  ;;  %v95_v52 = vmul.f32 0.03125, %v89_v50 }
 0x12c   :  { %v98_v53 = vadd.f32 1e-05, %v94_v51  ;;  %v99_v54 = vadd.f32 1e-05, %v95_v52 }
 0x12d   :  { %v92_v55 = vpop.xlane.xlu1 %91 }
 0x12e   :  { %4839 = vrsqrt.f32 %v98_v53  ;;  %v96_v56 = vmul.f32 0.03125, %v92_v55 }
 0x12f   :  { %4841 = vrsqrt.f32 %v99_v54 }
 0x130   :  { %v100_v57 = vadd.f32 1e-05, %v96_v56 }
 0x132   :  { %4843 = vrsqrt.f32 %v100_v57 }
 0x134   :  { %v4838_v58 = vpop.eup %4837 }
 0x135   :  { %v105_v60 = vmul.f32 %v4838_v58, %v5081_v12 }
 0x137   :  { %v115_v61 = vmul.f32 %v3658_v59, %v105_v60 }
 0x138   :  { %v4840_v62 = vpop.eup %4839 }
 0x139   :  { %v4842_v3 = vpop.eup %4841  ;;  %v106_v4 = vmul.f32 %v4840_v62, %v5091_v20  ;;  %4105 = vmatprep.mubr.msk.f32.mxu1 %vm55_vm0, %v115_v61  ;;  %4133 = vmatprep.mubr.msk.f32.mxu0 %vm55_vm0, %v115_v61  ;;  %v315_v20 = vld [vmem:[%s5857_s4 + $0x30] sm:$0xff] }
 0x13a   :  { %v107_v9 = vmul.f32 %v4842_v3, %v5084_v13 }
 0x13b   :  { %v116_v10 = vmul.f32 %v3658_v59, %v106_v4 }
 0x13c   :  { %v4844_v11 = vpop.eup %4843  ;;  %v117_v12 = vmul.f32 %v3658_v59, %v107_v9 }
 0x13d   :  { %v108_v16 = vmul.f32 %v4844_v11, %v5094_v21  ;;  %4106 = vmatmul.mubr.msk.f32.vlgmr.msra.gmra.mrb[0].mxu1 %vm55_vm0, %v116_v10  ;;  %4134 = vmatmul.mubr.msk.f32.vlgmr.msra.gmra.mrb[0].mxu0 %vm55_vm0, %v116_v10  ;;  %v316_v21 = vld [vmem:[%s5857_s4 + $0x38] sm:$0xff] }
 0x13e   :  { %4560 = vmatpush3.bf16.msra.mxu1 %v4557_v43  ;;  %4108 = vmatprep.mubr.msk.f32.mxu1 %vm55_vm0, %v117_v12  ;;  %v4577_v22 = vpack.c.bf16 %v316_v21, %v315_v20 }
 0x13f   :  { %v118_v13 = vmul.f32 %v3658_v59, %v108_v16  ;;  %4136 = vmatprep.mubr.msk.f32.mxu0 %vm55_vm0, %v117_v12  ;;  %4584 = vmatpush3.bf16.msra.mxu0 %v4581_v45 }
 0x140   :  { %4562 = vmatprep.subr.bf16.mxu1 %v4561_v14  ;;  %4586 = vmatprep.subr.bf16.mxu0 %v4585_v15 }
 0x141   :  { %4109 = vmatmul.mubr.msk.f32.gmra.mrb[2].mxu1 %vm55_vm0, %v118_v13  ;;  %4137 = vmatmul.mubr.msk.f32.gmra.mrb[2].mxu0 %vm55_vm0, %v118_v13 }
 0x142   :  { %4564 = vmatpush3.bf16.msra.mxu1 %v4561_v14  ;;  %4119 = vmatprep.mubr.msk.f32.mxu1 %vm55_vm0, %v115_v61 }
 0x143   :  { %4588 = vmatpush3.bf16.msra.mxu0 %v4585_v15  ;;  %4161 = vmatprep.mubr.msk.f32.mxu0 %vm55_vm0, %v115_v61  ;;  %v52_v15 = vld [vmem:[%s5860_s1 + $0x10] sm:$0xff] }
 0x144   :  { %4574 = vmatprep.subr.bf16.mxu1 %v4573_v19 }
 0x145   :  { %4120 = vmatmul.mubr.msk.f32.vlgmr.msra.gmra.mrb[4].mxu1 %vm55_vm0, %v116_v10 }
 0x146   :  { %4576 = vmatpush3.bf16.msra.mxu1 %v4573_v19  ;;  %4162 = vmatmul.mubr.msk.f32.vlgmr.msra.gmra.mrb[4].mxu0 %vm55_vm0, %v116_v10 }
 0x147   :  { %4122 = vmatprep.mubr.msk.f32.mxu1 %vm55_vm0, %v117_v12  ;;  %4164 = vmatprep.mubr.msk.f32.mxu0 %vm55_vm0, %v117_v12 }
 0x148   :  { %4578 = vmatprep.subr.bf16.mxu1 %v4577_v22 }
 0x149   :  { %4123 = vmatmul.mubr.msk.f32.gmra.mrb[6].mxu1 %vm55_vm0, %v118_v13 }
 0x14a   :  { %4580 = vmatpush3.bf16.msra.mxu1 %v4577_v22  ;;  %4165 = vmatmul.mubr.msk.f32.gmra.mrb[6].mxu0 %vm55_vm0, %v118_v13 }
 0x14b   :  { %4147 = vmatprep.mubr.msk.f32.mxu1 %vm55_vm0, %v115_v61  ;;  %4590 = vmatprep.subr.bf16.mxu1 %v4589_v25 }
 0x14d   :  { %4148 = vmatmul.mubr.msk.f32.vlgmr.msra.gmra.mrb[8].mxu1 %vm55_vm0, %v116_v10 }
 0x14e   :  { %4150 = vmatprep.mubr.msk.f32.mxu1 %vm55_vm0, %v117_v12  ;;  %4592 = vmatpush3.bf16.msra.mxu1 %v4589_v25 }
 0x14f   :  { %4594 = vmatprep.subr.bf16.mxu1 %v4593_v28 }
 0x151   :  { %4151 = vmatmul.mubr.msk.f32.gmra.mrb[10].mxu1 %vm55_vm0, %v118_v13 }
 0x152   :  { %4596 = vmatpush3.bf16.msra.mxu1 %v4593_v28  ;;  %4175 = vmatprep.mubr.msk.f32.mxu1 %vm55_vm0, %v115_v61 }
 0x155   :  { %4176 = vmatmul.mubr.msk.f32.vlgmr.msra.gmra.mrb[12].mxu1 %vm55_vm0, %v116_v10 }
 0x156   :  { %4178 = vmatprep.mubr.msk.f32.mxu1 %vm55_vm0, %v117_v12 }
 0x159   :  { %4179 = vmatmul.mubr.msk.f32.gmra.mrb[14].mxu1 %vm55_vm0, %v118_v13  ;;  %v53_v13 = vld [vmem:[%s5860_s1 + $0x18] sm:$0xff] }
 0x210   :  { %v4107_v29 = vpop.f32.mrb[0].mxu1  ;;  %v4135_v30 = vpop.f32.mrb[0].mxu0 }
 0x211   :  { %v205_v31 = vpop.f32.mrb[1].mxu1  ;;  %v383_v32 = vpop.f32.mrb[1].mxu0 }
 0x212   :  { %v4597_v34 = vpack.c.bf16 %v4135_v30, %v383_v32  ;;  %4189 = vmatprep.mubr.msk.f32.mxu0 %vm665_vm1, %v205_v31 }
 0x214   :  { %v4110_v35 = vpop.f32.mrb[2].mxu1  ;;  %v4138_v36 = vpop.f32.mrb[2].mxu0  ;;  %4599 = vmatprep.subr.msk.bf16.mxu0 %vm5209_vm2, %v4597_v34 }
 0x215   :  { %v215_v37 = vpop.f32.mrb[3].mxu1  ;;  %v393_v38 = vpop.f32.mrb[3].mxu0  ;;  %4602 = vmatpush3.bf16.xpose.msk.msra.mxu0 %vm5209_vm2, %v4597_v34 }
 0x216   :  { %v4603_v39 = vpack.c.bf16 %v4138_v36, %v393_v38 }
 0x218   :  { %v4121_v40 = vpop.f32.mrb[4].mxu1  ;;  %4605 = vmatprep.subr.msk.bf16.mxu0 %vm5209_vm2, %v4603_v39 }
 0x219   :  { %v4163_v41 = vpop.f32.mrb[4].mxu0  ;;  %v290_v42 = vpop.f32.mrb[5].mxu1 }
 0x21a   :  { %v561_v43 = vpop.f32.mrb[5].mxu0  ;;  %4203 = vmatprep.mubr.msk.f32.mxu1 %vm665_vm1, %v290_v42 }
 0x21b   :  { %v4621_v44 = vpack.c.bf16 %v4163_v41, %v561_v43 }
 0x21c   :  { %v4124_v45 = vpop.f32.mrb[6].mxu1 }
 0x21d   :  { %v4166_v46 = vpop.f32.mrb[6].mxu0  ;;  %v300_v47 = vpop.f32.mrb[7].mxu1  ;;  %4608 = vmatpush3.bf16.xpose.msk.msra.mxu0 %vm5209_vm2, %v4603_v39 }
 0x21e   :  { %v571_v48 = vpop.f32.mrb[7].mxu0  ;;  %4622 = vmatprep.subr.bf16.mxu0 %v4621_v44 }
 0x21f   :  { %v4625_v49 = vpack.c.bf16 %v4166_v46, %v571_v48 }
 0x220   :  { %v4149_v50 = vpop.f32.mrb[8].mxu1 }
 0x221   :  { %v468_v51 = vpop.f32.mrb[9].mxu1 }
 0x222   :  { %v4609_v52 = vpack.c.bf16 %v4149_v50, %v468_v51 }
 0x224   :  { %v4152_v53 = vpop.f32.mrb[10].mxu1  ;;  %4190 = vmatmul.mubr.msk.f32.vlgmr.msra.gmra.mrb[8].mxu0 %vm665_vm1, %v4107_v29  ;;  %4611 = vmatprep.subr.msk.bf16.mxu1 %vm5209_vm2, %v4609_v52 }
 0x225   :  { %v478_v54 = vpop.f32.mrb[11].mxu1  ;;  %4192 = vmatprep.mubr.msk.f32.mxu0 %vm665_vm1, %v215_v37  ;;  %4614 = vmatpush3.bf16.xpose.msk.msra.mxu1 %vm5209_vm2, %v4609_v52 }
 0x226   :  { %v4615_v55 = vpack.c.bf16 %v4152_v53, %v478_v54  ;;  %4624 = vmatpush3.bf16.msra.mxu0 %v4621_v44 }
 0x227   :  { %4626 = vmatprep.subr.bf16.mxu0 %v4625_v49 }
 0x228   :  { %v4177_v56 = vpop.f32.mrb[12].mxu1  ;;  %4193 = vmatmul.mubr.msk.f32.gmra.mrb[10].mxu0 %vm665_vm1, %v4110_v35  ;;  %4617 = vmatprep.subr.msk.bf16.mxu1 %vm5209_vm2, %v4615_v55 }
 0x229   :  { %v646_v57 = vpop.f32.mrb[13].mxu1 }
 0x22a   :  { %v4629_v58 = vpack.c.bf16 %v4177_v56, %v646_v57  ;;  %4628 = vmatpush3.bf16.msra.mxu0 %v4625_v49 }
 0x22c   :  { %v4180_v59 = vpop.f32.mrb[14].mxu1 }
 0x22d   :  { %v656_v60 = vpop.f32.mrb[15].mxu1  ;;  %4620 = vmatpush3.bf16.xpose.msk.msra.mxu1 %vm5209_vm2, %v4615_v55 }
 0x22e   :  { %v4633_v61 = vpack.c.bf16 %v4180_v59, %v656_v60  ;;  %4630 = vmatprep.subr.bf16.mxu1 %v4629_v58 }
 0x234   :  { %4204 = vmatmul.mubr.msk.f32.vlgmr.msra.gmra.mrb[16].mxu1 %vm665_vm1, %v4121_v40 }
 0x235   :  { %4206 = vmatprep.mubr.msk.f32.mxu1 %vm665_vm1, %v300_v47  ;;  %4632 = vmatpush3.bf16.msra.mxu1 %v4629_v58 }
 0x236   :  { %4634 = vmatprep.subr.bf16.mxu1 %v4633_v61 }
 0x238   :  { %4207 = vmatmul.mubr.msk.f32.gmra.mrb[18].mxu1 %vm665_vm1, %v4124_v45 }
 0x239   :  { %4636 = vmatpush3.bf16.msra.mxu1 %v4633_v61 }
 0x2f7   :  { %v4191_v62 = vpop.f32.mrb[8].mxu0 }
 0x2f8   :  { %v885_v3 = vmul.f32 0.25, %v4191_v62  ;;  %v756_v4 = vpop.f32.mrb[9].mxu0 }
 0x2f9   :  { %v884_v6 = vmul.f32 0.25, %v756_v4 }
 0x2fa   :  { %v893_v8 = vadd.f32 %v885_v3, %v51_v63 }
 0x2fb   :  { %v4194_v9 = vpop.f32.mrb[10].mxu0  ;;  %v892_v12 = vadd.f32 %v884_v6, %v50_v7 }
 0x2fc   :  { %v766_v10 = vpop.f32.mrb[11].mxu0  ;;  %v903_v11 = vsel %vm55_vm0, %v893_v8, -inf  ;;  %v887_v16 = vmul.f32 0.25, %v4194_v9 }
 0x2fd   :  { %v886_v14 = vmul.f32 0.25, %v766_v10  ;;  %904 = vmax.xlane.f32.xlu0 %v903_v11  ;;  %v900_v17 = vsel %vm55_vm0, %v892_v12, -inf }
 0x2fe   :  { %v895_v20 = vadd.f32 %v887_v16, %v53_v13 }
 0x2ff   :  { %v894_v18 = vadd.f32 %v886_v14, %v52_v15 }
 0x300   :  { %v909_v24 = vsel %vm55_vm0, %v895_v20, -inf }
 0x301   :  { %901 = vmax.xlane.f32.xlu0 %v900_v17  ;;  %v906_v19 = vsel %vm55_vm0, %v894_v18, -inf }
 0x305   :  { %907 = vmax.xlane.f32.xlu0 %v906_v19  ;;  %v1182_v19 = vld [vmem:[%s5861_s6] sm:$0xff] }
 0x307   :  { %v4205_v21 = vpop.f32.mrb[16].mxu1 }
 0x308   :  { %v889_v22 = vmul.f32 0.25, %v4205_v21  ;;  %v865_v23 = vpop.f32.mrb[17].mxu1 }
 0x309   :  { %v888_v25 = vmul.f32 0.25, %v865_v23  ;;  %910 = vmax.xlane.f32.xlu0 %v909_v24 }
 0x30a   :  { %v897_v26 = vadd.f32 %v889_v22, %v51_v63 }
 0x30b   :  { %v4208_v27 = vpop.f32.mrb[18].mxu1  ;;  %v896_v30 = vadd.f32 %v888_v25, %v50_v7 }
 0x30c   :  { %v875_v28 = vpop.f32.mrb[19].mxu1  ;;  %v915_v29 = vsel %vm55_vm0, %v897_v26, -inf  ;;  %v891_v32 = vmul.f32 0.25, %v4208_v27 }
 0x30d   :  { %v890_v31 = vmul.f32 0.25, %v875_v28  ;;  %916 = vmax.xlane.f32.xlu1 %v915_v29  ;;  %v912_v34 = vsel %vm55_vm0, %v896_v30, -inf }
 0x30e   :  { %v899_v37 = vadd.f32 %v891_v32, %v53_v13 }
 0x30f   :  { %v898_v35 = vadd.f32 %v890_v31, %v52_v15 }
 0x310   :  { %v921_v38 = vsel %vm55_vm0, %v899_v37, -inf }
 0x311   :  { %913 = vmax.xlane.f32.xlu1 %v912_v34  ;;  %v918_v36 = vsel %vm55_vm0, %v898_v35, -inf }
 0x315   :  { %919 = vmax.xlane.f32.xlu1 %v918_v36 }
 0x319   :  { %922 = vmax.xlane.f32.xlu1 %v921_v38 }
 0x38a   :  { %v905_v39 = vpop.xlane.xlu0 %904 }
 0x38b   :  { %v925_v40 = vsub.f32 %v893_v8, %v905_v39 }
 0x38d   :  { %v934_v41 = vmul.f32 1.442695, %v925_v40 }
 0x38e   :  { %v902_v42 = vpop.xlane.xlu0 %901 }
 0x38f   :  { %4845 = vpow2.f32 %v934_v41  ;;  %v924_v43 = vsub.f32 %v892_v12, %v902_v42 }
 0x391   :  { %v932_v44 = vmul.f32 1.442695, %v924_v43 }
 0x392   :  { %v908_v45 = vpop.xlane.xlu0 %907 }
 0x393   :  { %4847 = vpow2.f32 %v932_v44  ;;  %v926_v46 = vsub.f32 %v894_v18, %v908_v45 }
 0x395   :  { %v936_v47 = vmul.f32 1.442695, %v926_v46 }
 0x396   :  { %v911_v48 = vpop.xlane.xlu0 %910 }
 0x397   :  { %4849 = vpow2.f32 %v936_v47  ;;  %v927_v49 = vsub.f32 %v895_v20, %v911_v48  ;;  %v1183_v20 = vld [vmem:[%s5861_s6 + $0x8] sm:$0xff]  ;;  %v1184_v47 = vld [vmem:[%s5861_s6 + $0x10] sm:$0xff]  ;;  %v1185_v48 = vld [vmem:[%s5861_s6 + $0x18] sm:$0xff] }
 0x398   :  { %v4637_v21 = vpack.c.bf16 %v1183_v20, %v1182_v19 }
 0x399   :  { %v4846_v50 = vpop.eup %4845  ;;  %v938_v51 = vmul.f32 1.442695, %v927_v49  ;;  %v4641_v49 = vpack.c.bf16 %v1185_v48, %v1184_v47  ;;  %v1462_v47 = vld [vmem:[%s5862_s8 + $0x18] sm:$0xff] }
 0x39a   :  { %v917_v52 = vpop.xlane.xlu1 %916  ;;  %v951_v53 = vsel %vm55_vm0, %v4846_v50, 0.0  ;;  %4638 = vmatprep.subr.bf16.mxu0 %v4637_v21 }
 0x39b   :  { %4851 = vpow2.f32 %v938_v51  ;;  %v929_v54 = vsub.f32 %v897_v26, %v917_v52  ;;  %952 = vadd.xlane.f32.xlu0 %v951_v53  ;;  %4642 = vmatprep.subr.bf16.mxu1 %v4641_v49 }
 0x39d   :  { %v4848_v55 = vpop.eup %4847  ;;  %v942_v56 = vmul.f32 1.442695, %v929_v54 }
 0x39e   :  { %v914_v57 = vpop.xlane.xlu1 %913  ;;  %v948_v58 = vsel %vm55_vm0, %v4848_v55, 0.0 }
 0x39f   :  { %4853 = vpow2.f32 %v942_v56  ;;  %v928_v59 = vsub.f32 %v896_v30, %v914_v57  ;;  %949 = vadd.xlane.f32.xlu0 %v948_v58 }
 0x3a1   :  { %v4850_v60 = vpop.eup %4849  ;;  %v940_v61 = vmul.f32 1.442695, %v928_v59 }
 0x3a2   :  { %v920_v62 = vpop.xlane.xlu1 %919  ;;  %v954_v63 = vsel %vm55_vm0, %v4850_v60, 0.0 }
 0x3a3   :  { %4855 = vpow2.f32 %v940_v61  ;;  %v930_v3 = vsub.f32 %v898_v35, %v920_v62  ;;  %955 = vadd.xlane.f32.xlu0 %v954_v63 }
 0x3a5   :  { %v4852_v4 = vpop.eup %4851  ;;  %v944_v6 = vmul.f32 1.442695, %v930_v3 }
 0x3a6   :  { %v923_v7 = vpop.xlane.xlu1 %922  ;;  %v957_v8 = vsel %vm55_vm0, %v4852_v4, 0.0 }
 0x3a7   :  { %4857 = vpow2.f32 %v944_v6  ;;  %v931_v9 = vsub.f32 %v899_v37, %v923_v7  ;;  %958 = vadd.xlane.f32.xlu0 %v957_v8 }
 0x3a9   :  { %v4854_v10 = vpop.eup %4853  ;;  %v946_v11 = vmul.f32 1.442695, %v931_v9 }
 0x3aa   :  { %v963_v12 = vsel %vm55_vm0, %v4854_v10, 0.0 }
 0x3ab   :  { %4859 = vpow2.f32 %v946_v11  ;;  %964 = vadd.xlane.f32.xlu1 %v963_v12 }
 0x3ad   :  { %v4856_v14 = vpop.eup %4855 }
 0x3ae   :  { %v960_v15 = vsel %vm55_vm0, %v4856_v14, 0.0 }
 0x3af   :  { %961 = vadd.xlane.f32.xlu1 %v960_v15 }
 0x3b1   :  { %v4858_v16 = vpop.eup %4857 }
 0x3b2   :  { %v966_v17 = vsel %vm55_vm0, %v4858_v16, 0.0 }
 0x3b3   :  { %967 = vadd.xlane.f32.xlu1 %v966_v17 }
 0x3b5   :  { %v4860_v18 = vpop.eup %4859 }
 0x3b6   :  { %v969_v13 = vsel %vm55_vm0, %v4860_v18, 0.0 }
 0x3b7   :  { %970 = vadd.xlane.f32.xlu1 %v969_v13 }
 0x428   :  { %v953_v22 = vpop.xlane.xlu0 %952 }
 0x429   :  { %4861 = vrcp.f32 %v953_v22 }
 0x42c   :  { %v950_v23 = vpop.xlane.xlu0 %949 }
 0x42d   :  { %4863 = vrcp.f32 %v950_v23 }
 0x430   :  { %v956_v24 = vpop.xlane.xlu0 %955 }
 0x431   :  { %4865 = vrcp.f32 %v956_v24 }
 0x433   :  { %v4862_v26 = vpop.eup %4861 }
 0x434   :  { %v959_v25 = vpop.xlane.xlu0 %958  ;;  %v981_v30 = vmul.f32 %v4862_v26, %v4846_v50 }
 0x435   :  { %4867 = vrcp.f32 %v959_v25 }
 0x437   :  { %v4864_v27 = vpop.eup %4863 }
 0x438   :  { %v965_v28 = vpop.xlane.xlu1 %964  ;;  %v980_v29 = vmul.f32 %v4864_v27, %v4848_v55 }
 0x439   :  { %4869 = vrcp.f32 %v965_v28 }
 0x43a   :  { %4217 = vmatprep.mubr.msk.f32.mxu0 %vm55_vm0, %v980_v29 }
 0x43b   :  { %v4866_v31 = vpop.eup %4865  ;;  %4218 = vmatmul.mubr.msk.f32.vlgmr.msra.gmra.mrb[12].mxu0 %vm55_vm0, %v981_v30 }
 0x43c   :  { %v962_v32 = vpop.xlane.xlu1 %961  ;;  %v982_v34 = vmul.f32 %v4866_v31, %v4850_v60  ;;  %4640 = vmatpush3.bf16.msra.mxu0 %v4637_v21 }
 0x43d   :  { %4871 = vrcp.f32 %v962_v32 }
 0x43e   :  { %4220 = vmatprep.mubr.msk.f32.mxu0 %vm55_vm0, %v982_v34 }
 0x43f   :  { %v4868_v35 = vpop.eup %4867 }
 0x440   :  { %v968_v36 = vpop.xlane.xlu1 %967  ;;  %v983_v37 = vmul.f32 %v4868_v35, %v4852_v4 }
 0x441   :  { %4873 = vrcp.f32 %v968_v36 }
 0x442   :  { %4221 = vmatmul.mubr.msk.f32.gmra.mrb[14].mxu0 %vm55_vm0, %v983_v37 }
 0x443   :  { %v4870_v39 = vpop.eup %4869 }
 0x444   :  { %v971_v38 = vpop.xlane.xlu1 %970  ;;  %v985_v42 = vmul.f32 %v4870_v39, %v4854_v10 }
 0x445   :  { %4875 = vrcp.f32 %v971_v38 }
 0x447   :  { %v4872_v40 = vpop.eup %4871 }
 0x448   :  { %v984_v41 = vmul.f32 %v4872_v40, %v4856_v14 }
 0x44a   :  { %4231 = vmatprep.mubr.msk.f32.mxu1 %vm55_vm0, %v984_v41 }
 0x44b   :  { %v4874_v43 = vpop.eup %4873  ;;  %4232 = vmatmul.mubr.msk.f32.vlgmr.msra.gmra.mrb[20].mxu1 %vm55_vm0, %v985_v42 }
 0x44c   :  { %v986_v44 = vmul.f32 %v4874_v43, %v4858_v16  ;;  %4644 = vmatpush3.bf16.msra.mxu1 %v4641_v49  ;;  %v1459_v43 = vld [vmem:[%s5862_s8] sm:$0xff] }
 0x44d   :  { %v1580_v49 = vld [vmem:[%s5863_s9] sm:$0xff] }
 0x44e   :  { %4234 = vmatprep.mubr.msk.f32.mxu1 %vm55_vm0, %v986_v44  ;;  %v1460_v44 = vld [vmem:[%s5862_s8 + $0x8] sm:$0xff] }
 0x44f   :  { %v4876_v45 = vpop.eup %4875 }
 0x450   :  { %v987_v46 = vmul.f32 %v4876_v45, %v4860_v18  ;;  %v4645_v45 = vpack.c.bf16 %v1460_v44, %v1459_v43 }
 0x452   :  { %4235 = vmatmul.mubr.msk.f32.gmra.mrb[22].mxu1 %vm55_vm0, %v987_v46  ;;  %4646 = vmatprep.subr.bf16.mxu0 %v4645_v45  ;;  %v1461_v46 = vld [vmem:[%s5862_s8 + $0x10] sm:$0xff] }
 0x453   :  { %v4649_v48 = vpack.c.bf16 %v1462_v47, %v1461_v46 }
 0x50e   :  { %v4219_v50 = vpop.f32.mrb[12].mxu0 }
 0x50f   :  { %v1066_v51 = vpop.f32.mrb[13].mxu0 }
 0x510   :  { %4241 = vmatprep.mubr.msk.f32.mxu0 %vm665_vm1, %v1066_v51  ;;  %v1582_v51 = vld [vmem:[%s5863_s9 + $0x10] sm:$0xff] }
 0x511   :  { %4242 = vmatmul.mubr.msk.f32.vlgmr.msra.gmra.mrb[16].mxu0 %vm665_vm1, %v4219_v50  ;;  %v1581_v50 = vld [vmem:[%s5863_s9 + $0x8] sm:$0xff] }
 0x512   :  { %4648 = vmatpush3.bf16.msra.mxu0 %v4645_v45 }
 0x513   :  { %4650 = vmatprep.subr.bf16.mxu0 %v4649_v48 }
 0x515   :  { %v4222_v52 = vpop.f32.mrb[14].mxu0 }
 0x516   :  { %v1076_v53 = vpop.f32.mrb[15].mxu0  ;;  %4652 = vmatpush3.bf16.msra.mxu0 %v4649_v48 }
 0x517   :  { %4244 = vmatprep.mubr.msk.f32.mxu0 %vm665_vm1, %v1076_v53  ;;  %v1583_v53 = vld [vmem:[%s5863_s9 + $0x18] sm:$0xff] }
 0x518   :  { %4245 = vmatmul.mubr.msk.f32.gmra.mrb[18].mxu0 %vm665_vm1, %v4222_v52  ;;  %v4653_v52 = vpack.c.bf16 %v1581_v50, %v1580_v49 }
 0x51a   :  { %4654 = vmatprep.subr.bf16.mxu1 %v4653_v52 }
 0x51e   :  { %v4233_v54 = vpop.f32.mrb[20].mxu1 }
 0x51f   :  { %v1163_v55 = vpop.f32.mrb[21].mxu1 }
 0x520   :  { %4251 = vmatprep.mubr.msk.f32.mxu1 %vm665_vm1, %v1163_v55  ;;  %v1584_v55 = vld [vmem:[%s5863_s9 + $0x20] sm:$0xff] }
 0x521   :  { %4252 = vmatmul.mubr.msk.f32.vlgmr.msra.gmra.mrb[24].mxu1 %vm665_vm1, %v4233_v54  ;;  %v4657_v54 = vpack.c.bf16 %v1583_v53, %v1582_v51 }
 0x522   :  { %4656 = vmatpush3.bf16.msra.mxu1 %v4653_v52 }
 0x523   :  { %4658 = vmatprep.subr.bf16.mxu1 %v4657_v54 }
 0x525   :  { %v4236_v56 = vpop.f32.mrb[22].mxu1 }
 0x526   :  { %v1173_v57 = vpop.f32.mrb[23].mxu1  ;;  %4660 = vmatpush3.bf16.msra.mxu1 %v4657_v54 }
 0x527   :  { %4254 = vmatprep.mubr.msk.f32.mxu1 %vm665_vm1, %v1173_v57 }
 0x528   :  { %4255 = vmatmul.mubr.msk.f32.gmra.mrb[26].mxu1 %vm665_vm1, %v4236_v56  ;;  %v1585_v56 = vld [vmem:[%s5863_s9 + $0x28] sm:$0xff] }
 0x529   :  { %v4661_v57 = vpack.c.bf16 %v1585_v56, %v1584_v55 }
 0x52b   :  { %4662 = vmatprep.subr.bf16.mxu1 %v4661_v57 }
 0x52c   :  { %4664 = vmatpush3.bf16.msra.mxu1 %v4661_v57 }
 0x5e4   :  { %v4243_v58 = vpop.f32.mrb[16].mxu0 }
 0x5e5   :  { %v1264_v59 = vpop.f32.mrb[17].mxu0  ;;  %v1383_v63 = vsel %vm55_vm0, %v4243_v58, 0.0 }
 0x5e6   :  { %v1380_v6 = vsel %vm55_vm0, %v1264_v59, 0.0 }
 0x5eb   :  { %v4246_v60 = vpop.f32.mrb[18].mxu0 }
 0x5ec   :  { %v1274_v61 = vpop.f32.mrb[19].mxu0  ;;  %v1389_v16 = vsel %vm55_vm0, %v4246_v60, 0.0 }
 0x5f4   :  { %v4253_v62 = vpop.f32.mrb[24].mxu1 }
 0x5f5   :  { %v1384_v3 = vsel %vm55_vm0, %v4253_v62, 0.0  ;;  %v1361_v4 = vpop.f32.mrb[25].mxu1 }
 0x5f6   :  { %v1385_v7 = vadd.f32 %v1384_v3, %v1383_v63  ;;  %v1381_v8 = vsel %vm55_vm0, %v1361_v4, 0.0 }
 0x5f7   :  { %v1382_v9 = vadd.f32 %v1381_v8, %v1380_v6 }
 0x5f8   :  { %v5298_v10 = vadd.f32 %v1385_v7, %v5065_v2  ;;  %v1386_v2 = vsel %vm55_vm0, %v1274_v61, 0.0 }
 0x5f9   :  { %v5301_v11 = vadd.f32 %v1382_v9, %v5055_v0 }
 0x5fa   :  { %v1400_v12 = vsel %vm55_vm0, %v5298_v10, 0.0 }
 0x5fb   :  { %1401 = vadd.xlane.f32.xlu1 %v1400_v12  ;;  %v4256_v14 = vpop.f32.mrb[26].mxu1  ;;  %v1397_v15 = vsel %vm55_vm0, %v5301_v11, 0.0 }
 0x5fc   :  { %v1390_v17 = vsel %vm55_vm0, %v4256_v14, 0.0  ;;  %1398 = vadd.xlane.f32.xlu0 %v1397_v15  ;;  %v1371_v18 = vpop.f32.mrb[27].mxu1 }
 0x5fd   :  { %v1391_v13 = vadd.f32 %v1390_v17, %v1389_v16  ;;  %v1387_v0 = vsel %vm55_vm0, %v1371_v18, 0.0  ;;  %v3715_v16 = vld [vmem:[%s5864_s7] ss:$0 sm:$0xff] }
 0x5fe   :  { %v1388_v19 = vadd.f32 %v1387_v0, %v1386_v2 }
 0x5ff   :  { %v5312_v20 = vadd.f32 %v1391_v13, %v5074_v5 }
 0x600   :  { %v5315_v21 = vadd.f32 %v1388_v19, %v5060_v1 }
 0x601   :  { %v1406_v22 = vsel %vm55_vm0, %v5312_v20, 0.0 }
 0x602   :  { %1407 = vadd.xlane.f32.xlu1 %v1406_v22  ;;  %v1403_v23 = vsel %vm55_vm0, %v5315_v21, 0.0 }
 0x603   :  { %1404 = vadd.xlane.f32.xlu0 %v1403_v23 }
 0x688   :  { %v1402_v24 = vpop.xlane.xlu1 %1401 }
 0x689   :  { %v1410_v25 = vmul.f32 0.03125, %v1402_v24  ;;  %v1399_v26 = vpop.xlane.xlu0 %1398 }
 0x68a   :  { %v1409_v27 = vmul.f32 0.03125, %v1399_v26  ;;  %v1587_v26 = vld [vmem:[%s5863_s9 + $0x38] sm:$0xff] }
 0x68b   :  { %v5322_v28 = vsub.f32 %v5298_v10, %v1410_v25  ;;  %v1586_v25 = vld [vmem:[%s5863_s9 + $0x30] sm:$0xff] }
 0x68c   :  { %v5325_v5 = vsub.f32 %v5301_v11, %v1409_v27  ;;  %v4665_v27 = vpack.c.bf16 %v1587_v26, %v1586_v25 }
 0x68d   :  { %v1418_v1 = vmul.f32 %v5322_v28, %v5322_v28 }
 0x68e   :  { %v1417_v29 = vmul.f32 %v5325_v5, %v5325_v5  ;;  %4666 = vmatprep.subr.bf16.mxu1 %v4665_v27 }
 0x68f   :  { %v1408_v30 = vpop.xlane.xlu1 %1407  ;;  %v1424_v31 = vsel %vm55_vm0, %v1418_v1, 0.0  ;;  %4668 = vmatpush3.bf16.msra.mxu1 %v4665_v27 }
 0x690   :  { %v1412_v32 = vmul.f32 0.03125, %v1408_v30  ;;  %1425 = vadd.xlane.f32.xlu1 %v1424_v31  ;;  %v1405_v34 = vpop.xlane.xlu0 %1404  ;;  %v1421_v35 = vsel %vm55_vm0, %v1417_v29, 0.0  ;;  %v1590_v29 = vld [vmem:[%s5863_s9 + $0x50] sm:$0xff]  ;;  %v1591_v30 = vld [vmem:[%s5863_s9 + $0x58] sm:$0xff] }
 0x691   :  { %v1411_v36 = vmul.f32 0.03125, %v1405_v34  ;;  %1422 = vadd.xlane.f32.xlu0 %v1421_v35  ;;  %v4673_v31 = vpack.c.bf16 %v1591_v30, %v1590_v29  ;;  %v1593_v34 = vld [vmem:[%s5863_s9 + $0x68] sm:$0xff] }
 0x692   :  { %v5334_v37 = vsub.f32 %v5312_v20, %v1412_v32  ;;  %v1592_v32 = vld [vmem:[%s5863_s9 + $0x60] sm:$0xff] }
 0x693   :  { %v5337_v38 = vsub.f32 %v5315_v21, %v1411_v36  ;;  %v4677_v35 = vpack.c.bf16 %v1593_v34, %v1592_v32  ;;  %v1594_v36 = vld [vmem:[%s5863_s9 + $0x70] sm:$0xff]  ;;  %v3723_v32 = vld [vmem:[%s5856_s3 + $0x48] sm:$0xff]  ;;  %v3754_v34 = vld [vmem:[%s5858_s5 + $0x40] sm:$0xff] }
 0x694   :  { %v1420_v39 = vmul.f32 %v5334_v37, %v5334_v37 }
 0x695   :  { %v1419_v40 = vmul.f32 %v5337_v38, %v5337_v38 }
 0x696   :  { %v1430_v41 = vsel %vm55_vm0, %v1420_v39, 0.0 }
 0x697   :  { %1431 = vadd.xlane.f32.xlu1 %v1430_v41  ;;  %v1427_v42 = vsel %vm55_vm0, %v1419_v40, 0.0 }
 0x698   :  { %1428 = vadd.xlane.f32.xlu0 %v1427_v42 }
 0x71d   :  { %v1426_v58 = vpop.xlane.xlu1 %1425 }
 0x71e   :  { %v1434_v59 = vmul.f32 0.03125, %v1426_v58  ;;  %v1423_v60 = vpop.xlane.xlu0 %1422 }
 0x71f   :  { %v1433_v61 = vmul.f32 0.03125, %v1423_v60 }
 0x720   :  { %v1438_v62 = vadd.f32 1e-05, %v1434_v59 }
 0x721   :  { %v1437_v63 = vadd.f32 1e-05, %v1433_v61 }
 0x722   :  { %4877 = vrsqrt.f32 %v1438_v62 }
 0x723   :  { %4879 = vrsqrt.f32 %v1437_v63 }
 0x724   :  { %v1432_v3 = vpop.xlane.xlu1 %1431 }
 0x725   :  { %v1436_v4 = vmul.f32 0.03125, %v1432_v3  ;;  %v1429_v6 = vpop.xlane.xlu0 %1428 }
 0x726   :  { %v1435_v7 = vmul.f32 0.03125, %v1429_v6 }
 0x727   :  { %v1440_v8 = vadd.f32 1e-05, %v1436_v4 }
 0x728   :  { %v1439_v9 = vadd.f32 1e-05, %v1435_v7 }
 0x729   :  { %4881 = vrsqrt.f32 %v1440_v8 }
 0x72a   :  { %4883 = vrsqrt.f32 %v1439_v9 }
 0x72c   :  { %v4878_v12 = vpop.eup %4877 }
 0x72d   :  { %v4880_v14 = vpop.eup %4879  ;;  %v1446_v15 = vmul.f32 %v4878_v12, %v5322_v28  ;;  %v1588_v28 = vld [vmem:[%s5863_s9 + $0x40] sm:$0xff] }
 0x72e   :  { %v1445_v17 = vmul.f32 %v4880_v14, %v5325_v5  ;;  %v1589_v5 = vld [vmem:[%s5863_s9 + $0x48] sm:$0xff] }
 0x72f   :  { %v1456_v2 = vmul.f32 %v3715_v16, %v1446_v15  ;;  %v4669_v1 = vpack.c.bf16 %v1589_v5, %v1588_v28 }
 0x730   :  { %v1455_v18 = vmul.f32 %v3715_v16, %v1445_v17 }
 0x731   :  { %4670 = vmatprep.subr.bf16.mxu1 %v4669_v1 }
 0x732   :  { %4265 = vmatprep.mubr.msk.f32.mxu0 %vm55_vm0, %v1455_v18  ;;  %4672 = vmatpush3.bf16.msra.mxu1 %v4669_v1 }
 0x733   :  { %v4882_v13 = vpop.eup %4881  ;;  %4266 = vmatmul.mubr.msk.f32.vlgmr.msra.gmra.mrb[20].mxu0 %vm55_vm0, %v1456_v2  ;;  %4674 = vmatprep.subr.bf16.mxu1 %v4673_v31 }
 0x734   :  { %v4884_v0 = vpop.eup %4883  ;;  %v1448_v19 = vmul.f32 %v4882_v13, %v5334_v37  ;;  %v1595_v37 = vld [vmem:[%s5863_s9 + $0x78] sm:$0xff] }
 0x735   :  { %v1447_v22 = vmul.f32 %v4884_v0, %v5337_v38  ;;  %v4681_v38 = vpack.c.bf16 %v1595_v37, %v1594_v36  ;;  %v3755_v36 = vld [vmem:[%s5858_s5 + $0x48] sm:$0xff] }
 0x736   :  { %v1458_v24 = vmul.f32 %v3715_v16, %v1448_v19  ;;  %4676 = vmatpush3.bf16.msra.mxu1 %v4673_v31  ;;  %v3722_v31 = vld [vmem:[%s5856_s3 + $0x40] sm:$0xff]  ;;  %v4717_v37 = vpack.c.bf16 %v3755_v36, %v3754_v34 }
 0x737   :  { %v1457_v23 = vmul.f32 %v3715_v16, %v1447_v22  ;;  %4678 = vmatprep.subr.bf16.mxu1 %v4677_v35 }
 0x739   :  { %4268 = vmatprep.mubr.msk.f32.mxu0 %vm55_vm0, %v1457_v23 }
 0x73a   :  { %4269 = vmatmul.mubr.msk.f32.gmra.mrb[22].mxu0 %vm55_vm0, %v1458_v24  ;;  %4680 = vmatpush3.bf16.msra.mxu1 %v4677_v35  ;;  %v4685_v35 = vpack.c.bf16 %v3723_v32, %v3722_v31  ;;  %v3761_v31 = vld [vmem:[%s5858_s5 + $0x78] sm:$0xff] }
 0x73b   :  { %4682 = vmatprep.subr.bf16.mxu1 %v4681_v38 }
 0x73c   :  { %4686 = vmatprep.subr.bf16.mxu0 %v4685_v35 }
 0x73d   :  { %4688 = vmatpush3.bf16.msra.mxu0 %v4685_v35 }
 0x73e   :  { %4684 = vmatpush3.bf16.msra.mxu1 %v4681_v38  ;;  %v3724_v38 = vld [vmem:[%s5856_s3 + $0x50] sm:$0xff] }
 0x73f   :  { %4718 = vmatprep.subr.bf16.mxu1 %v4717_v37 }
 0x806   :  { %v4267_v39 = vpop.f32.mrb[20].mxu0 }
 0x807   :  { %v1565_v40 = vmul.f32 0.70710677, %v4267_v39  ;;  %v1541_v41 = vpop.f32.mrb[21].mxu0  ;;  %v1561_v52 = vmul.f32 0.5, %v4267_v39  ;;  %v3725_v39 = vld [vmem:[%s5856_s3 + $0x58] sm:$0xff] }
 0x808   :  { %v1564_v42 = vmul.f32 0.70710677, %v1541_v41  ;;  %v1560_v50 = vmul.f32 0.5, %v1541_v41  ;;  %v4689_v41 = vpack.c.bf16 %v3725_v39, %v3724_v38 }
 0x809   :  { %4885 = verf.f32 %v1565_v40  ;;  %v3756_v40 = vld [vmem:[%s5858_s5 + $0x50] sm:$0xff] }
 0x80a   :  { %4887 = verf.f32 %v1564_v42  ;;  %v3757_v42 = vld [vmem:[%s5858_s5 + $0x58] sm:$0xff]  ;;  %4690 = vmatprep.subr.bf16.mxu0 %v4689_v41 }
 0x80b   :  { %4692 = vmatpush3.bf16.msra.mxu0 %v4689_v41 }
 0x80d   :  { %v4270_v43 = vpop.f32.mrb[22].mxu0 }
 0x80e   :  { %v1567_v44 = vmul.f32 0.70710677, %v4270_v43  ;;  %v1551_v45 = vpop.f32.mrb[23].mxu0  ;;  %v1563_v60 = vmul.f32 0.5, %v4270_v43  ;;  %v4721_v43 = vpack.c.bf16 %v3757_v42, %v3756_v40 }
 0x80f   :  { %v1566_v46 = vmul.f32 0.70710677, %v1551_v45  ;;  %v1562_v58 = vmul.f32 0.5, %v1551_v45  ;;  %v3727_v45 = vld [vmem:[%s5856_s3 + $0x68] sm:$0xff] }
 0x810   :  { %4889 = verf.f32 %v1567_v44  ;;  %v3726_v44 = vld [vmem:[%s5856_s3 + $0x60] sm:$0xff] }
 0x811   :  { %4891 = verf.f32 %v1566_v46  ;;  %v4693_v46 = vpack.c.bf16 %v3727_v45, %v3726_v44 }
 0x813   :  { %v4886_v47 = vpop.eup %4885  ;;  %4694 = vmatprep.subr.bf16.mxu0 %v4693_v46 }
 0x814   :  { %v4888_v48 = vpop.eup %4887  ;;  %v1573_v49 = vadd.f32 1.0, %v4886_v47 }
 0x815   :  { %v1572_v51 = vadd.f32 1.0, %v4888_v48 }
 0x816   :  { %v1577_v54 = vmul.f32 %v1573_v49, %v1561_v52 }
 0x817   :  { %v1576_v53 = vmul.f32 %v1572_v51, %v1560_v50 }
 0x819   :  { %4303 = vmatprep.mubr.f32.mxu1 %v1576_v53 }
 0x81a   :  { %v4890_v55 = vpop.eup %4889  ;;  %4304 = vmatmul.mubr.f32.vlgmr.msra.gmra.mrb[28].mxu1 %v1577_v54 }
 0x81b   :  { %v4892_v56 = vpop.eup %4891  ;;  %v1575_v57 = vadd.f32 1.0, %v4890_v55  ;;  %4720 = vmatpush3.bf16.msra.mxu1 %v4717_v37 }
 0x81c   :  { %v1574_v59 = vadd.f32 1.0, %v4892_v56  ;;  %4722 = vmatprep.subr.bf16.mxu1 %v4721_v43 }
 0x81d   :  { %v1579_v62 = vmul.f32 %v1575_v57, %v1563_v60 }
 0x81e   :  { %v1578_v61 = vmul.f32 %v1574_v59, %v1562_v58 }
 0x81f   :  { %4724 = vmatpush3.bf16.msra.mxu1 %v4721_v43 }
 0x820   :  { %4306 = vmatprep.mubr.f32.mxu1 %v1578_v61  ;;  %v3721_v61 = vld [vmem:[%s5859_s2 + $0x1] ss:$0 sm:$0xff] }
 0x821   :  { %4307 = vmatmul.mubr.f32.gmra.mrb[30].mxu1 %v1579_v62 }
 0x8ed   :  { %v4305_v63 = vpop.f32.mrb[28].mxu1 }
 0x8ee   :  { %v5417_v3 = vadd.f32 %v4305_v63, %v5298_v10  ;;  %v1662_v4 = vpop.f32.mrb[29].mxu1 }
 0x8ef   :  { %v5420_v6 = vadd.f32 %v1662_v4, %v5301_v11  ;;  %v3728_v4 = vld [vmem:[%s5856_s3 + $0x70] sm:$0xff] }
 0x8f0   :  { %v1690_v7 = vsel %vm55_vm0, %v5417_v3, 0.0 }
 0x8f1   :  { %1691 = vadd.xlane.f32.xlu1 %v1690_v7  ;;  %v1687_v8 = vsel %vm55_vm0, %v5420_v6, 0.0  ;;  %v3729_v7 = vld [vmem:[%s5856_s3 + $0x78] sm:$0xff] }
 0x8f2   :  { %1688 = vadd.xlane.f32.xlu0 %v1687_v8 }
 0x8f4   :  { %v4308_v9 = vpop.f32.mrb[30].mxu1 }
 0x8f5   :  { %v5427_v12 = vadd.f32 %v4308_v9, %v5312_v20  ;;  %v1672_v14 = vpop.f32.mrb[31].mxu1 }
 0x8f6   :  { %v5430_v10 = vadd.f32 %v1672_v14, %v5315_v21  ;;  %v4697_v14 = vpack.c.bf16 %v3729_v7, %v3728_v4 }
 0x8f7   :  { %v1696_v11 = vsel %vm55_vm0, %v5427_v12, 0.0 }
 0x8f8   :  { %1697 = vadd.xlane.f32.xlu1 %v1696_v11  ;;  %v1693_v15 = vsel %vm55_vm0, %v5430_v10, 0.0 }
 0x8f9   :  { %1694 = vadd.xlane.f32.xlu0 %v1693_v15 }
 0x97e   :  { %v1692_v16 = vpop.xlane.xlu1 %1691 }
 0x97f   :  { %v1700_v17 = vmul.f32 0.03125, %v1692_v16  ;;  %v1689_v18 = vpop.xlane.xlu0 %1688 }
 0x980   :  { %v1699_v2 = vmul.f32 0.03125, %v1689_v18  ;;  %v3739_v18 = vld [vmem:[%s5857_s4 + $0x48] sm:$0xff] }
 0x981   :  { %v5437_v13 = vsub.f32 %v5417_v3, %v1700_v17  ;;  %v3738_v17 = vld [vmem:[%s5857_s4 + $0x40] sm:$0xff] }
 0x982   :  { %v5440_v20 = vsub.f32 %v5420_v6, %v1699_v2 }
 0x983   :  { %v1708_v21 = vmul.f32 %v5437_v13, %v5437_v13 }
 0x984   :  { %v1707_v0 = vmul.f32 %v5440_v20, %v5440_v20 }
 0x985   :  { %v1698_v19 = vpop.xlane.xlu1 %1697  ;;  %v1714_v22 = vsel %vm55_vm0, %v1708_v21, 0.0 }
 0x986   :  { %v1702_v23 = vmul.f32 0.03125, %v1698_v19  ;;  %1715 = vadd.xlane.f32.xlu1 %v1714_v22  ;;  %v1695_v24 = vpop.xlane.xlu0 %1694  ;;  %v1711_v25 = vsel %vm55_vm0, %v1707_v0, 0.0  ;;  %v3740_v0 = vld [vmem:[%s5857_s4 + $0x50] sm:$0xff]  ;;  %v3741_v19 = vld [vmem:[%s5857_s4 + $0x58] sm:$0xff] }
 0x987   :  { %v1701_v26 = vmul.f32 0.03125, %v1695_v24  ;;  %1712 = vadd.xlane.f32.xlu0 %v1711_v25  ;;  %v4705_v22 = vpack.c.bf16 %v3741_v19, %v3740_v0  ;;  %v3743_v24 = vld [vmem:[%s5857_s4 + $0x68] sm:$0xff] }
 0x988   :  { %v5449_v27 = vsub.f32 %v5427_v12, %v1702_v23  ;;  %v3742_v23 = vld [vmem:[%s5857_s4 + $0x60] sm:$0xff] }
 0x989   :  { %v5452_v28 = vsub.f32 %v5430_v10, %v1701_v26  ;;  %v4709_v25 = vpack.c.bf16 %v3743_v24, %v3742_v23  ;;  %v3744_v26 = vld [vmem:[%s5857_s4 + $0x70] sm:$0xff] }
 0x98a   :  { %v1710_v5 = vmul.f32 %v5449_v27, %v5449_v27  ;;  %v4975_v24 = vld [vmem:[%s5860_s1 + $0x10] sm:$0xff] }
 0x98b   :  { %v1709_v1 = vmul.f32 %v5452_v28, %v5452_v28 }
 0x98c   :  { %v1720_v29 = vsel %vm55_vm0, %v1710_v5, 0.0  ;;  %v3758_v5 = vld [vmem:[%s5858_s5 + $0x60] sm:$0xff] }
 0x98d   :  { %1721 = vadd.xlane.f32.xlu1 %v1720_v29  ;;  %v1717_v30 = vsel %vm55_vm0, %v1709_v1, 0.0  ;;  %v3759_v1 = vld [vmem:[%s5858_s5 + $0x68] sm:$0xff] }
 0x98e   :  { %1718 = vadd.xlane.f32.xlu0 %v1717_v30  ;;  %v4725_v29 = vpack.c.bf16 %v3759_v1, %v3758_v5  ;;  %v3760_v30 = vld [vmem:[%s5858_s5 + $0x70] sm:$0xff] }
 0x98f   :  { %v4729_v32 = vpack.c.bf16 %v3761_v31, %v3760_v30  ;;  %v4976_v30 = vld [vmem:[%s5860_s1 + $0x18] sm:$0xff] }
 0xa13   :  { %v1716_v47 = vpop.xlane.xlu1 %1715 }
 0xa14   :  { %v1724_v48 = vmul.f32 0.03125, %v1716_v47  ;;  %v1713_v49 = vpop.xlane.xlu0 %1712 }
 0xa15   :  { %v1723_v50 = vmul.f32 0.03125, %v1713_v49 }
 0xa16   :  { %v1728_v51 = vadd.f32 1e-05, %v1724_v48 }
 0xa17   :  { %v1727_v52 = vadd.f32 1e-05, %v1723_v50 }
 0xa18   :  { %4893 = vrsqrt.f32 %v1728_v51 }
 0xa19   :  { %4895 = vrsqrt.f32 %v1727_v52 }
 0xa1a   :  { %v1722_v53 = vpop.xlane.xlu1 %1721 }
 0xa1b   :  { %v1726_v54 = vmul.f32 0.03125, %v1722_v53  ;;  %v1719_v55 = vpop.xlane.xlu0 %1718 }
 0xa1c   :  { %v1725_v56 = vmul.f32 0.03125, %v1719_v55 }
 0xa1d   :  { %v1730_v57 = vadd.f32 1e-05, %v1726_v54 }
 0xa1e   :  { %v1729_v58 = vadd.f32 1e-05, %v1725_v56 }
 0xa1f   :  { %4897 = vrsqrt.f32 %v1730_v57 }
 0xa20   :  { %4899 = vrsqrt.f32 %v1729_v58 }
 0xa22   :  { %v4894_v59 = vpop.eup %4893 }
 0xa23   :  { %v4896_v60 = vpop.eup %4895  ;;  %v1736_v62 = vmul.f32 %v4894_v59, %v5437_v13 }
 0xa24   :  { %v1735_v63 = vmul.f32 %v4896_v60, %v5440_v20  ;;  %v4701_v20 = vpack.c.bf16 %v3739_v18, %v3738_v17 }
 0xa25   :  { %v1746_v9 = vmul.f32 %v3721_v61, %v1736_v62 }
 0xa26   :  { %v1745_v8 = vmul.f32 %v3721_v61, %v1735_v63 }
 0xa28   :  { %4317 = vmatprep.mubr.msk.f32.mxu0 %vm55_vm0, %v1745_v8  ;;  %4373 = vmatprep.mubr.msk.f32.mxu1 %vm55_vm0, %v1745_v8 }
 0xa29   :  { %v4898_v11 = vpop.eup %4897  ;;  %4318 = vmatmul.mubr.msk.f32.vlgmr.msra.gmra.mrb[24].mxu0 %vm55_vm0, %v1746_v9  ;;  %4374 = vmatmul.mubr.msk.f32.vlgmr.msra.gmra.mrb[32].mxu1 %vm55_vm0, %v1746_v9 }
 0xa2a   :  { %v4900_v15 = vpop.eup %4899  ;;  %v1738_v16 = vmul.f32 %v4898_v11, %v5449_v27  ;;  %4696 = vmatpush3.bf16.msra.mxu0 %v4693_v46  ;;  %v3745_v27 = vld [vmem:[%s5857_s4 + $0x78] sm:$0xff]  ;;  %v4973_v11 = vld [vmem:[%s5860_s1 + $0x8] sm:$0xff] }
 0xa2b   :  { %v1737_v2 = vmul.f32 %v4900_v15, %v5452_v28  ;;  %4698 = vmatprep.subr.bf16.mxu0 %v4697_v14  ;;  %v4713_v28 = vpack.c.bf16 %v3745_v27, %v3744_v26 }
 0xa2c   :  { %v1748_v21 = vmul.f32 %v3721_v61, %v1738_v16 }
 0xa2d   :  { %v1747_v13 = vmul.f32 %v3721_v61, %v1737_v2  ;;  %v4974_v2 = vld [vmem:[%s5860_s1] sm:$0xff] }
 0xa2e   :  { %4700 = vmatpush3.bf16.msra.mxu0 %v4697_v14 }
 0xa2f   :  { %4320 = vmatprep.mubr.msk.f32.mxu0 %vm55_vm0, %v1747_v13  ;;  %4376 = vmatprep.mubr.msk.f32.mxu1 %vm55_vm0, %v1747_v13 }
 0xa30   :  { %4321 = vmatmul.mubr.msk.f32.gmra.mrb[26].mxu0 %vm55_vm0, %v1748_v21  ;;  %4377 = vmatmul.mubr.msk.f32.gmra.mrb[34].mxu1 %vm55_vm0, %v1748_v21 }
 0xa31   :  { %4331 = vmatprep.mubr.msk.f32.mxu0 %vm55_vm0, %v1745_v8  ;;  %4702 = vmatprep.subr.bf16.mxu0 %v4701_v20 }
 0xa34   :  { %4332 = vmatmul.mubr.msk.f32.vlgmr.msra.gmra.mrb[28].mxu0 %vm55_vm0, %v1746_v9 }
 0xa35   :  { %4704 = vmatpush3.bf16.msra.mxu0 %v4701_v20  ;;  %4334 = vmatprep.mubr.msk.f32.mxu0 %vm55_vm0, %v1747_v13 }
 0xa36   :  { %4706 = vmatprep.subr.bf16.mxu0 %v4705_v22 }
 0xa38   :  { %4335 = vmatmul.mubr.msk.f32.gmra.mrb[30].mxu0 %vm55_vm0, %v1748_v21 }
 0xa39   :  { %4708 = vmatpush3.bf16.msra.mxu0 %v4705_v22  ;;  %4345 = vmatprep.mubr.msk.f32.mxu0 %vm55_vm0, %v1745_v8 }
 0xa3a   :  { %4710 = vmatprep.subr.bf16.mxu0 %v4709_v25 }
 0xa3c   :  { %4346 = vmatmul.mubr.msk.f32.vlgmr.msra.gmra.mrb[32].mxu0 %vm55_vm0, %v1746_v9 }
 0xa3d   :  { %4712 = vmatpush3.bf16.msra.mxu0 %v4709_v25  ;;  %4348 = vmatprep.mubr.msk.f32.mxu0 %vm55_vm0, %v1747_v13 }
 0xa3e   :  { %4714 = vmatprep.subr.bf16.mxu0 %v4713_v28 }
 0xa40   :  { %4349 = vmatmul.mubr.msk.f32.gmra.mrb[34].mxu0 %vm55_vm0, %v1748_v21 }
 0xa41   :  { %4716 = vmatpush3.bf16.msra.mxu0 %v4713_v28  ;;  %4359 = vmatprep.mubr.msk.f32.mxu0 %vm55_vm0, %v1745_v8 }
 0xa42   :  { %4726 = vmatprep.subr.bf16.mxu0 %v4725_v29 }
 0xa44   :  { %4360 = vmatmul.mubr.msk.f32.vlgmr.msra.gmra.mrb[36].mxu0 %vm55_vm0, %v1746_v9 }
 0xa45   :  { %4362 = vmatprep.mubr.msk.f32.mxu0 %vm55_vm0, %v1747_v13  ;;  %4728 = vmatpush3.bf16.msra.mxu0 %v4725_v29 }
 0xa46   :  { %4730 = vmatprep.subr.bf16.mxu0 %v4729_v32 }
 0xa48   :  { %4363 = vmatmul.mubr.msk.f32.gmra.mrb[38].mxu0 %vm55_vm0, %v1748_v21 }
 0xa49   :  { %4732 = vmatpush3.bf16.msra.mxu0 %v4729_v32  ;;  %4387 = vmatprep.mubr.msk.f32.mxu0 %vm55_vm0, %v1745_v8 }
 0xa4c   :  { %4388 = vmatmul.mubr.msk.f32.vlgmr.msra.gmra.mrb[40].mxu0 %vm55_vm0, %v1746_v9 }
 0xa4d   :  { %4390 = vmatprep.mubr.msk.f32.mxu0 %vm55_vm0, %v1747_v13 }
 0xa50   :  { %4391 = vmatmul.mubr.msk.f32.gmra.mrb[42].mxu0 %vm55_vm0, %v1748_v21 }
 0xafc   :  { %v4319_v34 = vpop.f32.mrb[24].mxu0  ;;  %v4375_v35 = vpop.f32.mrb[32].mxu1 }
 0xafd   :  { %v1836_v36 = vpop.f32.mrb[25].mxu0  ;;  %v2194_v37 = vpop.f32.mrb[33].mxu1 }
 0xafe   :  { %v4757_v38 = vpack.c.bf16 %v4375_v35, %v2194_v37  ;;  %4401 = vmatprep.mubr.msk.f32.mxu1 %vm665_vm1, %v1836_v36 }
 0xb03   :  { %v4322_v39 = vpop.f32.mrb[26].mxu0  ;;  %v4378_v40 = vpop.f32.mrb[34].mxu1 }
 0xb04   :  { %v1846_v41 = vpop.f32.mrb[27].mxu0  ;;  %v2204_v42 = vpop.f32.mrb[35].mxu1 }
 0xb05   :  { %v4761_v43 = vpack.c.bf16 %v4378_v40, %v2204_v42 }
 0xb07   :  { %v4333_v44 = vpop.f32.mrb[28].mxu0 }
 0xb08   :  { %v1921_v45 = vpop.f32.mrb[29].mxu0 }
 0xb09   :  { %4415 = vmatprep.mubr.msk.f32.mxu0 %vm665_vm1, %v1921_v45 }
 0xb0b   :  { %v4336_v46 = vpop.f32.mrb[30].mxu0 }
 0xb0c   :  { %v1931_v47 = vpop.f32.mrb[31].mxu0 }
 0xb0f   :  { %v4347_v48 = vpop.f32.mrb[32].mxu0 }
 0xb10   :  { %v2015_v49 = vpop.f32.mrb[33].mxu0 }
 0xb11   :  { %v4733_v50 = vpack.c.bf16 %v4347_v48, %v2015_v49 }
 0xb13   :  { %v4350_v51 = vpop.f32.mrb[34].mxu0  ;;  %4735 = vmatprep.subr.msk.bf16.mxu1 %vm5209_vm2, %v4733_v50 }
 0xb14   :  { %v2025_v52 = vpop.f32.mrb[35].mxu0  ;;  %4738 = vmatpush3.bf16.xpose.msk.msra.mxu1 %vm5209_vm2, %v4733_v50 }
 0xb15   :  { %v4739_v53 = vpack.c.bf16 %v4350_v51, %v2025_v52 }
 0xb17   :  { %v4361_v54 = vpop.f32.mrb[36].mxu0  ;;  %4741 = vmatprep.subr.msk.bf16.mxu1 %vm5209_vm2, %v4739_v53 }
 0xb18   :  { %v2100_v55 = vpop.f32.mrb[37].mxu0 }
 0xb19   :  { %v4745_v56 = vpack.c.bf16 %v4361_v54, %v2100_v55 }
 0xb1b   :  { %v4364_v57 = vpop.f32.mrb[38].mxu0  ;;  %4747 = vmatprep.subr.msk.bf16.mxu0 %vm5209_vm2, %v4745_v56 }
 0xb1c   :  { %v2110_v58 = vpop.f32.mrb[39].mxu0  ;;  %4744 = vmatpush3.bf16.xpose.msk.msra.mxu1 %vm5209_vm2, %v4739_v53  ;;  %4750 = vmatpush3.bf16.xpose.msk.msra.mxu0 %vm5209_vm2, %v4745_v56 }
 0xb1d   :  { %v4751_v59 = vpack.c.bf16 %v4364_v57, %v2110_v58  ;;  %4758 = vmatprep.subr.bf16.mxu1 %v4757_v38 }
 0xb1f   :  { %v4389_v60 = vpop.f32.mrb[40].mxu0  ;;  %4753 = vmatprep.subr.msk.bf16.mxu0 %vm5209_vm2, %v4751_v59 }
 0xb20   :  { %v2279_v61 = vpop.f32.mrb[41].mxu0 }
 0xb21   :  { %v4765_v62 = vpack.c.bf16 %v4389_v60, %v2279_v61 }
 0xb23   :  { %v4392_v63 = vpop.f32.mrb[42].mxu0  ;;  %4402 = vmatmul.mubr.msk.f32.vlgmr.msra.gmra.mrb[36].mxu1 %vm665_vm1, %v4319_v34 }
 0xb24   :  { %v2289_v4 = vpop.f32.mrb[43].mxu0  ;;  %4404 = vmatprep.mubr.msk.f32.mxu1 %vm665_vm1, %v1846_v41  ;;  %4756 = vmatpush3.bf16.xpose.msk.msra.mxu0 %vm5209_vm2, %v4751_v59 }
 0xb25   :  { %v4769_v7 = vpack.c.bf16 %v4392_v63, %v2289_v4  ;;  %4760 = vmatpush3.bf16.msra.mxu1 %v4757_v38  ;;  %4766 = vmatprep.subr.bf16.mxu0 %v4765_v62 }
 0xb26   :  { %4762 = vmatprep.subr.bf16.mxu1 %v4761_v43 }
 0xb27   :  { %4405 = vmatmul.mubr.msk.f32.gmra.mrb[38].mxu1 %vm665_vm1, %v4322_v39 }
 0xb29   :  { %4764 = vmatpush3.bf16.msra.mxu1 %v4761_v43 }
 0xb2b   :  { %4416 = vmatmul.mubr.msk.f32.vlgmr.msra.gmra.mrb[44].mxu0 %vm665_vm1, %v4333_v44 }
 0xb2c   :  { %4418 = vmatprep.mubr.msk.f32.mxu0 %vm665_vm1, %v1931_v47  ;;  %4768 = vmatpush3.bf16.msra.mxu0 %v4765_v62 }
 0xb2d   :  { %4770 = vmatprep.subr.bf16.mxu0 %v4769_v7 }
 0xb2f   :  { %4419 = vmatmul.mubr.msk.f32.gmra.mrb[46].mxu0 %vm665_vm1, %v4336_v46 }
 0xb30   :  { %4772 = vmatpush3.bf16.msra.mxu0 %v4769_v7 }
 0xbf6   :  { %v4403_v8 = vpop.f32.mrb[36].mxu1 }
 0xbf7   :  { %v2517_v9 = vmul.f32 0.25, %v4403_v8  ;;  %v2388_v33 = vpop.f32.mrb[37].mxu1 }
 0xbf8   :  { %v2516_v14 = vmul.f32 0.25, %v2388_v33 }
 0xbf9   :  { %v2525_v15 = vadd.f32 %v4973_v11, %v2517_v9 }
 0xbfa   :  { %v4406_v16 = vpop.f32.mrb[38].mxu1  ;;  %v2524_v13 = vadd.f32 %v4974_v2, %v2516_v14 }
 0xbfb   :  { %v2398_v17 = vpop.f32.mrb[39].mxu1  ;;  %v2535_v18 = vsel %vm55_vm0, %v2525_v15, -inf  ;;  %v2519_v0 = vmul.f32 0.25, %v4406_v16 }
 0xbfc   :  { %v2518_v20 = vmul.f32 0.25, %v2398_v17  ;;  %2536 = vmax.xlane.f32.xlu0 %v2535_v18  ;;  %v2532_v23 = vsel %vm55_vm0, %v2524_v13, -inf }
 0xbfd   :  { %v2527_v31 = vadd.f32 %v4976_v30, %v2519_v0 }
 0xbfe   :  { %v4417_v21 = vpop.f32.mrb[44].mxu0  ;;  %v2526_v25 = vadd.f32 %v4975_v24, %v2518_v20 }
 0xbff   :  { %v2521_v19 = vmul.f32 0.25, %v4417_v21  ;;  %v2497_v22 = vpop.f32.mrb[45].mxu0  ;;  %v2541_v36 = vsel %vm55_vm0, %v2527_v31, -inf }
 0xc00   :  { %v2520_v26 = vmul.f32 0.25, %v2497_v22  ;;  %2533 = vmax.xlane.f32.xlu0 %v2532_v23  ;;  %v2538_v1 = vsel %vm55_vm0, %v2526_v25, -inf  ;;  %v3794_v23 = vld [vmem:[%s5861_s6 + $0x20] sm:$0xff] }
 0xc01   :  { %v2529_v27 = vadd.f32 %v4973_v11, %v2521_v19 }
 0xc02   :  { %v4420_v28 = vpop.f32.mrb[46].mxu0  ;;  %v2528_v32 = vadd.f32 %v4974_v2, %v2520_v26 }
 0xc03   :  { %v2507_v5 = vpop.f32.mrb[47].mxu0  ;;  %v2547_v29 = vsel %vm55_vm0, %v2529_v27, -inf  ;;  %v2523_v35 = vmul.f32 0.25, %v4420_v28 }
 0xc04   :  { %v2522_v34 = vmul.f32 0.25, %v2507_v5  ;;  %2539 = vmax.xlane.f32.xlu0 %v2538_v1  ;;  %2548 = vmax.xlane.f32.xlu1 %v2547_v29  ;;  %v2544_v37 = vsel %vm55_vm0, %v2528_v32, -inf }
 0xc05   :  { %v2531_v40 = vadd.f32 %v4976_v30, %v2523_v35 }
 0xc06   :  { %v2530_v38 = vadd.f32 %v4975_v24, %v2522_v34  ;;  %v3795_v24 = vld [vmem:[%s5861_s6 + $0x28] sm:$0xff] }
 0xc07   :  { %v2553_v41 = vsel %vm55_vm0, %v2531_v40, -inf }
 0xc08   :  { %2542 = vmax.xlane.f32.xlu0 %v2541_v36  ;;  %2545 = vmax.xlane.f32.xlu1 %v2544_v37  ;;  %v2550_v39 = vsel %vm55_vm0, %v2530_v38, -inf }
 0xc0c   :  { %2551 = vmax.xlane.f32.xlu1 %v2550_v39 }
 0xc10   :  { %2554 = vmax.xlane.f32.xlu1 %v2553_v41 }
 0xc89   :  { %v2537_v42 = vpop.xlane.xlu0 %2536 }
 0xc8a   :  { %v2557_v43 = vsub.f32 %v2525_v15, %v2537_v42 }
 0xc8c   :  { %v2566_v44 = vmul.f32 1.442695, %v2557_v43 }
 0xc8d   :  { %v2534_v45 = vpop.xlane.xlu0 %2533 }
 0xc8e   :  { %4901 = vpow2.f32 %v2566_v44  ;;  %v2556_v46 = vsub.f32 %v2524_v13, %v2534_v45 }
 0xc90   :  { %v2564_v47 = vmul.f32 1.442695, %v2556_v46 }
 0xc91   :  { %v2540_v48 = vpop.xlane.xlu0 %2539  ;;  %v2549_v49 = vpop.xlane.xlu1 %2548 }
 0xc92   :  { %4903 = vpow2.f32 %v2564_v47  ;;  %v2558_v50 = vsub.f32 %v2526_v25, %v2540_v48  ;;  %v2561_v51 = vsub.f32 %v2529_v27, %v2549_v49  ;;  %v4773_v25 = vpack.c.bf16 %v3795_v24, %v3794_v23  ;;  %v3796_v49 = vld [vmem:[%s5861_s6 + $0x30] sm:$0xff] }
 0xc94   :  { %v2568_v52 = vmul.f32 1.442695, %v2558_v50  ;;  %v2574_v53 = vmul.f32 1.442695, %v2561_v51  ;;  %4774 = vmatprep.subr.bf16.mxu1 %v4773_v25  ;;  %v3797_v50 = vld [vmem:[%s5861_s6 + $0x38] sm:$0xff] }
 0xc95   :  { %v2543_v54 = vpop.xlane.xlu0 %2542  ;;  %v2546_v55 = vpop.xlane.xlu1 %2545  ;;  %v4777_v51 = vpack.c.bf16 %v3797_v50, %v3796_v49  ;;  %v3816_v50 = vld [vmem:[%s5863_s9 + $0x80] sm:$0xff] }
 0xc96   :  { %4905 = vpow2.f32 %v2568_v52  ;;  %v2559_v56 = vsub.f32 %v2527_v31, %v2543_v54  ;;  %v2560_v57 = vsub.f32 %v2528_v32, %v2546_v55 }
 0xc97   :  { %4907 = vpow2.f32 %v2574_v53  ;;  %4778 = vmatprep.subr.bf16.mxu0 %v4777_v51 }
 0xc98   :  { %v4902_v58 = vpop.eup %4901  ;;  %v2570_v59 = vmul.f32 1.442695, %v2559_v56  ;;  %v2572_v60 = vmul.f32 1.442695, %v2560_v57 }
 0xc99   :  { %v2552_v61 = vpop.xlane.xlu1 %2551  ;;  %v2583_v62 = vsel %vm55_vm0, %v4902_v58, 0.0 }
 0xc9a   :  { %4909 = vpow2.f32 %v2570_v59  ;;  %v2562_v63 = vsub.f32 %v2530_v38, %v2552_v61  ;;  %2584 = vadd.xlane.f32.xlu0 %v2583_v62 }
 0xc9b   :  { %4911 = vpow2.f32 %v2572_v60 }
 0xc9c   :  { %v4904_v4 = vpop.eup %4903  ;;  %v2576_v7 = vmul.f32 1.442695, %v2562_v63 }
 0xc9d   :  { %v2555_v8 = vpop.xlane.xlu1 %2554  ;;  %v2580_v9 = vsel %vm55_vm0, %v4904_v4, 0.0 }
 0xc9e   :  { %4913 = vpow2.f32 %v2576_v7  ;;  %v2563_v33 = vsub.f32 %v2531_v40, %v2555_v8  ;;  %2581 = vadd.xlane.f32.xlu0 %v2580_v9 }
 0xca0   :  { %v4906_v14 = vpop.eup %4905  ;;  %v2578_v11 = vmul.f32 1.442695, %v2563_v33 }
 0xca1   :  { %v4908_v15 = vpop.eup %4907  ;;  %v2586_v16 = vsel %vm55_vm0, %v4906_v14, 0.0 }
 0xca2   :  { %4915 = vpow2.f32 %v2578_v11  ;;  %2587 = vadd.xlane.f32.xlu0 %v2586_v16  ;;  %v2595_v17 = vsel %vm55_vm0, %v4908_v15, 0.0 }
 0xca3   :  { %2596 = vadd.xlane.f32.xlu1 %v2595_v17 }
 0xca4   :  { %v4910_v18 = vpop.eup %4909 }
 0xca5   :  { %v4912_v2 = vpop.eup %4911  ;;  %v2589_v13 = vsel %vm55_vm0, %v4910_v18, 0.0 }
 0xca6   :  { %2590 = vadd.xlane.f32.xlu0 %v2589_v13  ;;  %v2592_v20 = vsel %vm55_vm0, %v4912_v2, 0.0 }
 0xca7   :  { %2593 = vadd.xlane.f32.xlu1 %v2592_v20 }
 0xca8   :  { %v4914_v21 = vpop.eup %4913 }
 0xca9   :  { %v2598_v0 = vsel %vm55_vm0, %v4914_v21, 0.0 }
 0xcab   :  { %2599 = vadd.xlane.f32.xlu1 %v2598_v0 }
 0xcac   :  { %v4916_v19 = vpop.eup %4915 }
 0xcad   :  { %v2601_v22 = vsel %vm55_vm0, %v4916_v19, 0.0 }
 0xcaf   :  { %2602 = vadd.xlane.f32.xlu1 %v2601_v22 }
 0xd27   :  { %v2585_v26 = vpop.xlane.xlu0 %2584 }
 0xd28   :  { %4917 = vrcp.f32 %v2585_v26 }
 0xd2b   :  { %v2582_v27 = vpop.xlane.xlu0 %2581 }
 0xd2c   :  { %4919 = vrcp.f32 %v2582_v27 }
 0xd2f   :  { %v2588_v28 = vpop.xlane.xlu0 %2587 }
 0xd30   :  { %4921 = vrcp.f32 %v2588_v28  ;;  %v2597_v5 = vpop.xlane.xlu1 %2596 }
 0xd31   :  { %4923 = vrcp.f32 %v2597_v5 }
 0xd32   :  { %v4918_v30 = vpop.eup %4917 }
 0xd33   :  { %v2591_v1 = vpop.xlane.xlu0 %2590  ;;  %v2613_v34 = vmul.f32 %v4918_v30, %v4902_v58 }
 0xd34   :  { %4925 = vrcp.f32 %v2591_v1  ;;  %v2594_v29 = vpop.xlane.xlu1 %2593 }
 0xd35   :  { %4927 = vrcp.f32 %v2594_v29 }
 0xd36   :  { %v4920_v31 = vpop.eup %4919 }
 0xd37   :  { %v2612_v32 = vmul.f32 %v4920_v31, %v4904_v4 }
 0xd38   :  { %v2600_v35 = vpop.xlane.xlu1 %2599 }
 0xd39   :  { %4929 = vrcp.f32 %v2600_v35  ;;  %4429 = vmatprep.mubr.msk.f32.mxu1 %vm55_vm0, %v2612_v32 }
 0xd3a   :  { %v4922_v36 = vpop.eup %4921  ;;  %4430 = vmatmul.mubr.msk.f32.vlgmr.msra.gmra.mrb[40].mxu1 %vm55_vm0, %v2613_v34 }
 0xd3b   :  { %v2614_v37 = vmul.f32 %v4922_v36, %v4906_v14  ;;  %4776 = vmatpush3.bf16.msra.mxu1 %v4773_v25  ;;  %v4924_v39 = vpop.eup %4923 }
 0xd3c   :  { %v2603_v38 = vpop.xlane.xlu1 %2602  ;;  %v2617_v44 = vmul.f32 %v4924_v39, %v4908_v15 }
 0xd3d   :  { %4931 = vrcp.f32 %v2603_v38  ;;  %4432 = vmatprep.mubr.msk.f32.mxu1 %vm55_vm0, %v2614_v37 }
 0xd3e   :  { %v4926_v40 = vpop.eup %4925 }
 0xd3f   :  { %v4928_v41 = vpop.eup %4927  ;;  %v2615_v42 = vmul.f32 %v4926_v40, %v4910_v18 }
 0xd40   :  { %v2616_v43 = vmul.f32 %v4928_v41, %v4912_v2 }
 0xd41   :  { %4433 = vmatmul.mubr.msk.f32.gmra.mrb[42].mxu1 %vm55_vm0, %v2615_v42 }
 0xd42   :  { %4443 = vmatprep.mubr.msk.f32.mxu0 %vm55_vm0, %v2616_v43 }
 0xd43   :  { %v4930_v45 = vpop.eup %4929  ;;  %4444 = vmatmul.mubr.msk.f32.vlgmr.msra.gmra.mrb[48].mxu0 %vm55_vm0, %v2617_v44  ;;  %v3808_v44 = vld [vmem:[%s5862_s8 + $0x20] sm:$0xff] }
 0xd44   :  { %v2618_v46 = vmul.f32 %v4930_v45, %v4914_v21  ;;  %4780 = vmatpush3.bf16.msra.mxu0 %v4777_v51  ;;  %v3809_v45 = vld [vmem:[%s5862_s8 + $0x28] sm:$0xff] }
 0xd45   :  { %v3817_v51 = vld [vmem:[%s5863_s9 + $0x88] sm:$0xff] }
 0xd46   :  { %4446 = vmatprep.mubr.msk.f32.mxu0 %vm55_vm0, %v2618_v46  ;;  %v4781_v46 = vpack.c.bf16 %v3809_v45, %v3808_v44 }
 0xd47   :  { %v4932_v47 = vpop.eup %4931 }
 0xd48   :  { %v2619_v48 = vmul.f32 %v4932_v47, %v4916_v19  ;;  %4782 = vmatprep.subr.bf16.mxu1 %v4781_v46  ;;  %v3810_v47 = vld [vmem:[%s5862_s8 + $0x30] sm:$0xff] }
 0xd4a   :  { %4447 = vmatmul.mubr.msk.f32.gmra.mrb[50].mxu0 %vm55_vm0, %v2619_v48  ;;  %v3811_v48 = vld [vmem:[%s5862_s8 + $0x38] sm:$0xff] }
 0xd4b   :  { %v4785_v49 = vpack.c.bf16 %v3811_v48, %v3810_v47 }
 0xe0d   :  { %v4431_v52 = vpop.f32.mrb[40].mxu1 }
 0xe0e   :  { %v2698_v53 = vpop.f32.mrb[41].mxu1 }
 0xe0f   :  { %4453 = vmatprep.mubr.msk.f32.mxu1 %vm665_vm1, %v2698_v53  ;;  %v4789_v53 = vpack.c.bf16 %v3817_v51, %v3816_v50 }
 0xe10   :  { %4454 = vmatmul.mubr.msk.f32.vlgmr.msra.gmra.mrb[44].mxu1 %vm665_vm1, %v4431_v52  ;;  %v3818_v52 = vld [vmem:[%s5863_s9 + $0x90] sm:$0xff] }
 0xe11   :  { %4784 = vmatpush3.bf16.msra.mxu1 %v4781_v46  ;;  %4790 = vmatprep.subr.bf16.mxu0 %v4789_v53 }
 0xe12   :  { %4786 = vmatprep.subr.bf16.mxu1 %v4785_v49 }
 0xe14   :  { %v4434_v54 = vpop.f32.mrb[42].mxu1 }
 0xe15   :  { %v2708_v55 = vpop.f32.mrb[43].mxu1  ;;  %4788 = vmatpush3.bf16.msra.mxu1 %v4785_v49 }
 0xe16   :  { %v4445_v56 = vpop.f32.mrb[48].mxu0  ;;  %4456 = vmatprep.mubr.msk.f32.mxu1 %vm665_vm1, %v2708_v55 }
 0xe17   :  { %v2795_v57 = vpop.f32.mrb[49].mxu0  ;;  %4457 = vmatmul.mubr.msk.f32.gmra.mrb[46].mxu1 %vm665_vm1, %v4434_v54  ;;  %v3819_v54 = vld [vmem:[%s5863_s9 + $0x98] sm:$0xff] }
 0xe18   :  { %4463 = vmatprep.mubr.msk.f32.mxu0 %vm665_vm1, %v2795_v57  ;;  %v4793_v55 = vpack.c.bf16 %v3819_v54, %v3818_v52  ;;  %v3821_v57 = vld [vmem:[%s5863_s9 + $0xa8] sm:$0xff] }
 0xe19   :  { %4464 = vmatmul.mubr.msk.f32.vlgmr.msra.gmra.mrb[52].mxu0 %vm665_vm1, %v4445_v56  ;;  %v3820_v56 = vld [vmem:[%s5863_s9 + $0xa0] sm:$0xff] }
 0xe1a   :  { %4792 = vmatpush3.bf16.msra.mxu0 %v4789_v53 }
 0xe1b   :  { %4794 = vmatprep.subr.bf16.mxu0 %v4793_v55 }
 0xe1d   :  { %v4448_v58 = vpop.f32.mrb[50].mxu0 }
 0xe1e   :  { %v2805_v59 = vpop.f32.mrb[51].mxu0  ;;  %4796 = vmatpush3.bf16.msra.mxu0 %v4793_v55 }
 0xe1f   :  { %4466 = vmatprep.mubr.msk.f32.mxu0 %vm665_vm1, %v2805_v59 }
 0xe20   :  { %4467 = vmatmul.mubr.msk.f32.gmra.mrb[54].mxu0 %vm665_vm1, %v4448_v58  ;;  %v4797_v58 = vpack.c.bf16 %v3821_v57, %v3820_v56 }
 0xe22   :  { %4798 = vmatprep.subr.bf16.mxu0 %v4797_v58 }
 0xe23   :  { %4800 = vmatpush3.bf16.msra.mxu0 %v4797_v58 }
 0xee3   :  { %v4455_v60 = vpop.f32.mrb[44].mxu1 }
 0xee4   :  { %v2897_v61 = vpop.f32.mrb[45].mxu1  ;;  %v3016_v7 = vsel %vm55_vm0, %v4455_v60, 0.0 }
 0xee5   :  { %v3013_v33 = vsel %vm55_vm0, %v2897_v61, 0.0 }
 0xeea   :  { %v4458_v62 = vpop.f32.mrb[46].mxu1 }
 0xeeb   :  { %v2907_v63 = vpop.f32.mrb[47].mxu1  ;;  %v3022_v20 = vsel %vm55_vm0, %v4458_v62, 0.0 }
 0xeec   :  { %v4465_v4 = vpop.f32.mrb[52].mxu0 }
 0xeed   :  { %v3017_v8 = vsel %vm55_vm0, %v4465_v4, 0.0  ;;  %v2994_v9 = vpop.f32.mrb[53].mxu0 }
 0xeee   :  { %v3018_v14 = vadd.f32 %v3017_v8, %v3016_v7  ;;  %v3014_v11 = vsel %vm55_vm0, %v2994_v9, 0.0 }
 0xeef   :  { %v3015_v15 = vadd.f32 %v3014_v11, %v3013_v33 }
 0xef0   :  { %v5648_v16 = vadd.f32 %v3018_v14, %v5417_v3  ;;  %v3019_v3 = vsel %vm55_vm0, %v2907_v63, 0.0 }
 0xef1   :  { %v5651_v17 = vadd.f32 %v3015_v15, %v5420_v6 }
 0xef2   :  { %v3034_v18 = vsel %vm55_vm0, %v5648_v16, 0.0 }
 0xef3   :  { %3035 = vadd.xlane.f32.xlu1 %v3034_v18  ;;  %v4468_v2 = vpop.f32.mrb[54].mxu0  ;;  %v3031_v13 = vsel %vm55_vm0, %v5651_v17, 0.0 }
 0xef4   :  { %v3023_v21 = vsel %vm55_vm0, %v4468_v2, 0.0  ;;  %3032 = vadd.xlane.f32.xlu0 %v3031_v13  ;;  %v3004_v0 = vpop.f32.mrb[55].mxu0  ;;  %v3807_v13 = vld [vmem:[%s5864_s7 + $0x1] ss:$0 sm:$0xff] }
 0xef5   :  { %v3024_v19 = vadd.f32 %v3023_v21, %v3022_v20  ;;  %v3020_v6 = vsel %vm55_vm0, %v3004_v0, 0.0 }
 0xef6   :  { %v3021_v22 = vadd.f32 %v3020_v6, %v3019_v3 }
 0xef7   :  { %v5662_v23 = vadd.f32 %v3024_v19, %v5427_v12 }
 0xef8   :  { %v5665_v24 = vadd.f32 %v3021_v22, %v5430_v10 }
 0xef9   :  { %v3040_v25 = vsel %vm55_vm0, %v5662_v23, 0.0 }
 0xefa   :  { %3041 = vadd.xlane.f32.xlu1 %v3040_v25  ;;  %v3037_v26 = vsel %vm55_vm0, %v5665_v24, 0.0 }
 0xefb   :  { %3038 = vadd.xlane.f32.xlu0 %v3037_v26 }
 0xf80   :  { %v3036_v27 = vpop.xlane.xlu1 %3035 }
 0xf81   :  { %v3044_v28 = vmul.f32 0.03125, %v3036_v27  ;;  %v3033_v5 = vpop.xlane.xlu0 %3032  ;;  %v3822_v27 = vld [vmem:[%s5863_s9 + $0xb0] sm:$0xff] }
 0xf82   :  { %v3043_v1 = vmul.f32 0.03125, %v3033_v5 }
 0xf83   :  { %v5672_v29 = vsub.f32 %v5648_v16, %v3044_v28  ;;  %v3823_v28 = vld [vmem:[%s5863_s9 + $0xb8] sm:$0xff] }
 0xf84   :  { %v5675_v12 = vsub.f32 %v5651_v17, %v3043_v1  ;;  %v4801_v5 = vpack.c.bf16 %v3823_v28, %v3822_v27  ;;  %v3824_v1 = vld [vmem:[%s5863_s9 + $0xc0] sm:$0xff] }
 0xf85   :  { %v3052_v10 = vmul.f32 %v5672_v29, %v5672_v29 }
 0xf86   :  { %v3051_v30 = vmul.f32 %v5675_v12, %v5675_v12  ;;  %4802 = vmatprep.subr.bf16.mxu0 %v4801_v5 }
 0xf87   :  { %v3042_v31 = vpop.xlane.xlu1 %3041  ;;  %v3058_v32 = vsel %vm55_vm0, %v3052_v10, 0.0  ;;  %4804 = vmatpush3.bf16.msra.mxu0 %v4801_v5  ;;  %v3826_v10 = vld [vmem:[%s5863_s9 + $0xd0] sm:$0xff] }
 0xf88   :  { %v3046_v34 = vmul.f32 0.03125, %v3042_v31  ;;  %3059 = vadd.xlane.f32.xlu1 %v3058_v32  ;;  %v3039_v35 = vpop.xlane.xlu0 %3038  ;;  %v3055_v36 = vsel %vm55_vm0, %v3051_v30, 0.0  ;;  %v3827_v30 = vld [vmem:[%s5863_s9 + $0xd8] sm:$0xff]  ;;  %v3828_v32 = vld [vmem:[%s5863_s9 + $0xe0] sm:$0xff] }
 0xf89   :  { %v3045_v37 = vmul.f32 0.03125, %v3039_v35  ;;  %3056 = vadd.xlane.f32.xlu0 %v3055_v36  ;;  %v4809_v31 = vpack.c.bf16 %v3827_v30, %v3826_v10  ;;  %v3830_v36 = vld [vmem:[%s5863_s9 + $0xf0] sm:$0xff] }
 0xf8a   :  { %v3050_v38 = vsub.f32 %v5662_v23, %v3046_v34  ;;  %v3829_v34 = vld [vmem:[%s5863_s9 + $0xe8] sm:$0xff] }
 0xf8b   :  { %v3049_v39 = vsub.f32 %v5665_v24, %v3045_v37  ;;  %v4813_v35 = vpack.c.bf16 %v3829_v34, %v3828_v32  ;;  %v3831_v37 = vld [vmem:[%s5863_s9 + $0xf8] sm:$0xff] }
 0xf8c   :  { %v3054_v40 = vmul.f32 %v3050_v38, %v3050_v38 }
 0xf8d   :  { %v3053_v41 = vmul.f32 %v3049_v39, %v3049_v39 }
 0xf8e   :  { %v3064_v42 = vsel %vm55_vm0, %v3054_v40, 0.0 }
 0xf8f   :  { %3065 = vadd.xlane.f32.xlu1 %v3064_v42  ;;  %v3061_v43 = vsel %vm55_vm0, %v3053_v41, 0.0 }
 0xf90   :  { %3062 = vadd.xlane.f32.xlu0 %v3061_v43 }
0x1015   :  { %v3060_v59 = vpop.xlane.xlu1 %3059 }
0x1016   :  { %v3068_v60 = vmul.f32 0.03125, %v3060_v59  ;;  %v3057_v61 = vpop.xlane.xlu0 %3056 }
0x1017   :  { %v3067_v62 = vmul.f32 0.03125, %v3057_v61 }
0x1018   :  { %v3072_v63 = vadd.f32 1e-05, %v3068_v60 }
0x1019   :  { %v3071_v4 = vadd.f32 1e-05, %v3067_v62 }
0x101a   :  { %4933 = vrsqrt.f32 %v3072_v63 }
0x101b   :  { %4935 = vrsqrt.f32 %v3071_v4 }
0x101c   :  { %v3066_v7 = vpop.xlane.xlu1 %3065 }
0x101d   :  { %v3070_v8 = vmul.f32 0.03125, %v3066_v7  ;;  %v3063_v9 = vpop.xlane.xlu0 %3062 }
0x101e   :  { %v3069_v33 = vmul.f32 0.03125, %v3063_v9 }
0x101f   :  { %v3074_v14 = vadd.f32 1e-05, %v3070_v8 }
0x1020   :  { %v3073_v11 = vadd.f32 1e-05, %v3069_v33 }
0x1021   :  { %4937 = vrsqrt.f32 %v3074_v14 }
0x1022   :  { %4939 = vrsqrt.f32 %v3073_v11 }
0x1024   :  { %v4934_v15 = vpop.eup %4933 }
0x1025   :  { %v4936_v18 = vpop.eup %4935  ;;  %v3080_v2 = vmul.f32 %v4934_v15, %v5672_v29  ;;  %v3825_v29 = vld [vmem:[%s5863_s9 + $0xc8] sm:$0xff] }
0x1026   :  { %v3079_v20 = vmul.f32 %v4936_v18, %v5675_v12  ;;  %v4805_v12 = vpack.c.bf16 %v3825_v29, %v3824_v1 }
0x1027   :  { %v3090_v0 = vmul.f32 %v3807_v13, %v3080_v2 }
0x1028   :  { %v3089_v21 = vmul.f32 %v3807_v13, %v3079_v20  ;;  %4806 = vmatprep.subr.bf16.mxu0 %v4805_v12 }
0x1029   :  { %4808 = vmatpush3.bf16.msra.mxu0 %v4805_v12 }
0x102a   :  { %4477 = vmatprep.mubr.msk.f32.mxu1 %vm55_vm0, %v3089_v21  ;;  %4810 = vmatprep.subr.bf16.mxu0 %v4809_v31 }
0x102b   :  { %v4938_v3 = vpop.eup %4937  ;;  %4478 = vmatmul.mubr.msk.f32.vlgmr.msra.gmra.mrb[48].mxu1 %vm55_vm0, %v3090_v0 }
0x102c   :  { %v4940_v19 = vpop.eup %4939  ;;  %v3082_v6 = vmul.f32 %v4938_v3, %v3050_v38  ;;  %v4817_v38 = vpack.c.bf16 %v3831_v37, %v3830_v36 }
0x102d   :  { %v3081_v22 = vmul.f32 %v4940_v19, %v3049_v39  ;;  %4812 = vmatpush3.bf16.msra.mxu0 %v4809_v31 }
0x102e   :  { %v3092_v26 = vmul.f32 %v3807_v13, %v3082_v6  ;;  %4814 = vmatprep.subr.bf16.mxu0 %v4813_v35 }
0x102f   :  { %v3091_v25 = vmul.f32 %v3807_v13, %v3081_v22 }
0x1031   :  { %4480 = vmatprep.mubr.msk.f32.mxu1 %vm55_vm0, %v3091_v25  ;;  %4816 = vmatpush3.bf16.msra.mxu0 %v4813_v35 }
0x1032   :  { %4481 = vmatmul.mubr.msk.f32.gmra.mrb[50].mxu1 %vm55_vm0, %v3092_v26  ;;  %4818 = vmatprep.subr.bf16.mxu0 %v4817_v38 }
0x1035   :  { %4820 = vmatpush3.bf16.msra.mxu0 %v4817_v38 }
0x10fe   :  { %v4479_v39 = vpop.f32.mrb[48].mxu1 }
0x10ff   :  { %v3200_v40 = vmul.f32 0.70710677, %v4479_v39  ;;  %v3176_v41 = vpop.f32.mrb[49].mxu1  ;;  %v3196_v52 = vmul.f32 0.5, %v4479_v39 }
0x1100   :  { %v3199_v42 = vmul.f32 0.70710677, %v3176_v41  ;;  %v3195_v50 = vmul.f32 0.5, %v3176_v41 }
0x1101   :  { %4941 = verf.f32 %v3200_v40 }
0x1102   :  { %4943 = verf.f32 %v3199_v42 }
0x1105   :  { %v4482_v43 = vpop.f32.mrb[50].mxu1 }
0x1106   :  { %v3202_v44 = vmul.f32 0.70710677, %v4482_v43  ;;  %v3186_v45 = vpop.f32.mrb[51].mxu1  ;;  %v3198_v60 = vmul.f32 0.5, %v4482_v43 }
0x1107   :  { %v3201_v46 = vmul.f32 0.70710677, %v3186_v45  ;;  %v3197_v58 = vmul.f32 0.5, %v3186_v45 }
0x1108   :  { %4945 = verf.f32 %v3202_v44  ;;  %v3832_v44 = vld [vmem:[%s5865_s10] ss:$0 sm:$0xff] }
0x1109   :  { %4947 = verf.f32 %v3201_v46 }
0x110b   :  { %v4942_v47 = vpop.eup %4941 }
0x110c   :  { %v4944_v48 = vpop.eup %4943  ;;  %v3208_v49 = vadd.f32 1.0, %v4942_v47 }
0x110d   :  { %v3207_v51 = vadd.f32 1.0, %v4944_v48 }
0x110e   :  { %v3212_v54 = vmul.f32 %v3208_v49, %v3196_v52 }
0x110f   :  { %v3211_v53 = vmul.f32 %v3207_v51, %v3195_v50 }
0x1111   :  { %4515 = vmatprep.mubr.f32.mxu0 %v3211_v53 }
0x1112   :  { %v4946_v55 = vpop.eup %4945  ;;  %4516 = vmatmul.mubr.f32.vlgmr.msra.gmra.mrb[56].mxu0 %v3212_v54 }
0x1113   :  { %v4948_v56 = vpop.eup %4947  ;;  %v3210_v57 = vadd.f32 1.0, %v4946_v55 }
0x1114   :  { %v3209_v59 = vadd.f32 1.0, %v4948_v56 }
0x1115   :  { %v3214_v62 = vmul.f32 %v3210_v57, %v3198_v60 }
0x1116   :  { %v3213_v61 = vmul.f32 %v3209_v59, %v3197_v58 }
0x1118   :  { %4518 = vmatprep.mubr.f32.mxu0 %v3213_v61 }
0x1119   :  { %4519 = vmatmul.mubr.f32.gmra.mrb[58].mxu0 %v3214_v62 }
0x11e5   :  { %v4517_v63 = vpop.f32.mrb[56].mxu0 }
0x11e6   :  { %v3318_v4 = vadd.f32 %v4517_v63, %v5648_v16  ;;  %v3298_v7 = vpop.f32.mrb[57].mxu0 }
0x11e7   :  { %v3317_v8 = vadd.f32 %v3298_v7, %v5651_v17  ;;  %v3441_v7 = vld [vmem:[%s5866_s11 + $0x8] sm:$0xff] }
0x11e8   :  { %v3325_v9 = vsel %vm55_vm0, %v3318_v4, 0.0 }
0x11e9   :  { %3326 = vadd.xlane.f32.xlu1 %v3325_v9  ;;  %v3322_v33 = vsel %vm55_vm0, %v3317_v8, 0.0  ;;  %v3442_v9 = vld [vmem:[%s5866_s11 + $0x10] sm:$0xff] }
0x11ea   :  { %3323 = vadd.xlane.f32.xlu0 %v3322_v33  ;;  %v3443_v33 = vld [vmem:[%s5866_s11 + $0x18] sm:$0xff] }
0x11ec   :  { %v4520_v14 = vpop.f32.mrb[58].mxu0 }
0x11ed   :  { %v3320_v11 = vadd.f32 %v4520_v14, %v5662_v23  ;;  %v3308_v15 = vpop.f32.mrb[59].mxu0  ;;  %v4825_v14 = vpack.c.bf16 %v3443_v33, %v3442_v9 }
0x11ee   :  { %v3319_v18 = vadd.f32 %v3308_v15, %v5665_v24  ;;  %v3546_v15 = vld [vmem:[%s5867_s12 + $0x8] sm:$0xff] }
0x11ef   :  { %v3331_v2 = vsel %vm55_vm0, %v3320_v11, 0.0 }
0x11f0   :  { %3332 = vadd.xlane.f32.xlu1 %v3331_v2  ;;  %v3328_v16 = vsel %vm55_vm0, %v3319_v18, 0.0 }
0x11f1   :  { %3329 = vadd.xlane.f32.xlu0 %v3328_v16 }
0x1276   :  { %v3327_v13 = vpop.xlane.xlu1 %3326 }
0x1277   :  { %v3335_v17 = vmul.f32 0.03125, %v3327_v13  ;;  %v3324_v20 = vpop.xlane.xlu0 %3323 }
0x1278   :  { %v3334_v21 = vmul.f32 0.03125, %v3324_v20 }
0x1279   :  { %v3339_v0 = vsub.f32 %v3318_v4, %v3335_v17  ;;  %v3440_v4 = vld [vmem:[%s5866_s11] sm:$0xff] }
0x127a   :  { %v3338_v3 = vsub.f32 %v3317_v8, %v3334_v21  ;;  %v4821_v8 = vpack.c.bf16 %v3441_v7, %v3440_v4 }
0x127b   :  { %v3343_v19 = vmul.f32 %v3339_v0, %v3339_v0 }
0x127c   :  { %v3342_v6 = vmul.f32 %v3338_v3, %v3338_v3  ;;  %4822 = vmatprep.subr.bf16.mxu1 %v4821_v8 }
0x127d   :  { %v3333_v22 = vpop.xlane.xlu1 %3332  ;;  %v3349_v23 = vsel %vm55_vm0, %v3343_v19, 0.0  ;;  %4824 = vmatpush3.bf16.msra.mxu1 %v4821_v8 }
0x127e   :  { %v3337_v25 = vmul.f32 0.03125, %v3333_v22  ;;  %3350 = vadd.xlane.f32.xlu1 %v3349_v23  ;;  %v3330_v24 = vpop.xlane.xlu0 %3329  ;;  %v3346_v26 = vsel %vm55_vm0, %v3342_v6, 0.0  ;;  %4826 = vmatprep.subr.bf16.mxu1 %v4825_v14 }
0x127f   :  { %v3336_v27 = vmul.f32 0.03125, %v3330_v24  ;;  %3347 = vadd.xlane.f32.xlu0 %v3346_v26 }
0x1280   :  { %v3341_v28 = vsub.f32 %v3320_v11, %v3337_v25  ;;  %v3545_v11 = vld [vmem:[%s5867_s12] sm:$0xff] }
0x1281   :  { %v3340_v5 = vsub.f32 %v3319_v18, %v3336_v27  ;;  %4828 = vmatpush3.bf16.msra.mxu1 %v4825_v14  ;;  %v4829_v18 = vpack.c.bf16 %v3546_v15, %v3545_v11 }
0x1282   :  { %v3345_v1 = vmul.f32 %v3341_v28, %v3341_v28 }
0x1283   :  { %v3344_v29 = vmul.f32 %v3340_v5, %v3340_v5  ;;  %4830 = vmatprep.subr.bf16.mxu1 %v4829_v18 }
0x1284   :  { %v3355_v12 = vsel %vm55_vm0, %v3345_v1, 0.0 }
0x1285   :  { %3356 = vadd.xlane.f32.xlu1 %v3355_v12  ;;  %v3352_v10 = vsel %vm55_vm0, %v3344_v29, 0.0 }
0x1286   :  { %3353 = vadd.xlane.f32.xlu0 %v3352_v10 }
0x130b   :  { %v3351_v30 = vpop.xlane.xlu1 %3350 }
0x130c   :  { %v3359_v31 = vmul.f32 0.03125, %v3351_v30  ;;  %v3348_v32 = vpop.xlane.xlu0 %3347 }
0x130d   :  { %v3358_v34 = vmul.f32 0.03125, %v3348_v32 }
0x130e   :  { %v3363_v35 = vadd.f32 1e-05, %v3359_v31 }
0x130f   :  { %v3362_v36 = vadd.f32 1e-05, %v3358_v34 }
0x1310   :  { %4949 = vrsqrt.f32 %v3363_v35 }
0x1311   :  { %4951 = vrsqrt.f32 %v3362_v36 }
0x1312   :  { %v3357_v37 = vpop.xlane.xlu1 %3356 }
0x1313   :  { %v3361_v38 = vmul.f32 0.03125, %v3357_v37  ;;  %v3354_v39 = vpop.xlane.xlu0 %3353 }
0x1314   :  { %v3360_v40 = vmul.f32 0.03125, %v3354_v39  ;;  %v3548_v39 = vld [vmem:[%s5867_s12 + $0x18] sm:$0xff] }
0x1315   :  { %v3365_v41 = vadd.f32 1e-05, %v3361_v38  ;;  %v3547_v38 = vld [vmem:[%s5867_s12 + $0x10] sm:$0xff] }
0x1316   :  { %v3364_v42 = vadd.f32 1e-05, %v3360_v40 }
0x1317   :  { %4953 = vrsqrt.f32 %v3365_v41 }
0x1318   :  { %4955 = vrsqrt.f32 %v3364_v42 }
0x131a   :  { %v4950_v43 = vpop.eup %4949 }
0x131b   :  { %v4952_v45 = vpop.eup %4951  ;;  %v3371_v46 = vmul.f32 %v4950_v43, %v3339_v0  ;;  %v4833_v43 = vpack.c.bf16 %v3548_v39, %v3547_v38 }
0x131c   :  { %v3370_v47 = vmul.f32 %v4952_v45, %v3338_v3 }
0x131d   :  { %v5771_v48 = vmul.f32 %v3832_v44, %v3371_v46 }
0x131e   :  { %v5773_v49 = vmul.f32 %v3832_v44, %v3370_v47 }
0x131f   :  { %v3385_v50 = vmul.f32 %v5771_v48, %v5771_v48 }
0x1320   :  { %v3384_v51 = vmul.f32 %v5773_v49, %v5773_v49 }
0x1321   :  { %v4954_v52 = vpop.eup %4953  ;;  %v3391_v53 = vsel %vm55_vm0, %v3385_v50, 0.0 }
0x1322   :  { %v4956_v54 = vpop.eup %4955  ;;  %3392 = vadd.xlane.f32.xlu1 %v3391_v53  ;;  %v3388_v55 = vsel %vm55_vm0, %v3384_v51, 0.0  ;;  %v3373_v56 = vmul.f32 %v4954_v52, %v3341_v28 }
0x1323   :  { %3389 = vadd.xlane.f32.xlu0 %v3388_v55  ;;  %v3372_v57 = vmul.f32 %v4956_v54, %v3340_v5 }
0x1324   :  { %v5781_v58 = vmul.f32 %v3832_v44, %v3373_v56 }
0x1325   :  { %v5783_v59 = vmul.f32 %v3832_v44, %v3372_v57 }
0x1326   :  { %v3387_v60 = vmul.f32 %v5781_v58, %v5781_v58 }
0x1327   :  { %v3386_v61 = vmul.f32 %v5783_v59, %v5783_v59 }
0x1328   :  { %v3397_v62 = vsel %vm55_vm0, %v3387_v60, 0.0 }
0x1329   :  { %3398 = vadd.xlane.f32.xlu1 %v3397_v62  ;;  %v3394_v63 = vsel %vm55_vm0, %v3386_v61, 0.0 }
0x132a   :  { %3395 = vadd.xlane.f32.xlu0 %v3394_v63 }
0x13af   :  { %v3393_v2 = vpop.xlane.xlu1 %3392 }
0x13b0   :  { %4957 = vrsqrt.f32 %v3393_v2  ;;  %v3390_v16 = vpop.xlane.xlu0 %3389  ;;  %vm3409_vm3 = vcmp.eq.f32.partialorder %v3393_v2, inf  ;;  %v3412_v3 = vand.u32 2147483648, %v3393_v2  ;;  %vm3411_vm4 = vcmp.eq.f32.partialorder %v3393_v2, 0.0 }
0x13b1   :  { %4959 = vrsqrt.f32 %v3390_v16  ;;  %vm3402_vm5 = vcmp.eq.f32.partialorder %v3390_v16, inf  ;;  %v3405_v22 = vand.u32 2147483648, %v3390_v16  ;;  %vm3404_vm6 = vcmp.eq.f32.partialorder %v3390_v16, 0.0 }
0x13b6   :  { %v3399_v13 = vpop.xlane.xlu1 %3398 }
0x13b7   :  { %4961 = vrsqrt.f32 %v3399_v13  ;;  %v3396_v17 = vpop.xlane.xlu0 %3395  ;;  %vm3423_vm7 = vcmp.eq.f32.partialorder %v3399_v13, inf  ;;  %v3426_v29 = vand.u32 2147483648, %v3399_v13  ;;  %vm3425_vm8 = vcmp.eq.f32.partialorder %v3399_v13, 0.0 }
0x13b8   :  { %4963 = vrsqrt.f32 %v3396_v17  ;;  %vm3416_vm9 = vcmp.eq.f32.partialorder %v3396_v17, inf  ;;  %v3419_v30 = vand.u32 2147483648, %v3396_v17  ;;  %vm3418_vm10 = vcmp.eq.f32.partialorder %v3396_v17, 0.0 }
0x13ba   :  { %v4958_v20 = vpop.eup %4957 }
0x13bb   :  { %v4960_v21 = vpop.eup %4959  ;;  %v3408_v0 = vmul.f32 %v4958_v20, %v3393_v2 }
0x13bc   :  { %v3401_v19 = vmul.f32 %v4960_v21, %v3390_v16 }
0x13bd   :  { %v3410_v6 = vsel %vm3409_vm3, %v3393_v2, %v3408_v0 }
0x13be   :  { %v3413_v23 = vsel %vm3411_vm4, %v3412_v3, %v3410_v6  ;;  %v3403_v25 = vsel %vm3402_vm5, %v3390_v16, %v3401_v19 }
0x13bf   :  { %v3429_v24 = vmax.f32 %v3413_v23, 1e-12  ;;  %v3406_v26 = vsel %vm3404_vm6, %v3405_v22, %v3403_v25 }
0x13c0   :  { %v3428_v27 = vmax.f32 %v3406_v26, 1e-12 }
0x13c1   :  { %v4962_v28 = vpop.eup %4961  ;;  %4965 = vrcp.f32 %v3429_v24 }
0x13c2   :  { %v4964_v5 = vpop.eup %4963  ;;  %4967 = vrcp.f32 %v3428_v27  ;;  %v3422_v1 = vmul.f32 %v4962_v28, %v3399_v13 }
0x13c3   :  { %v3415_v12 = vmul.f32 %v4964_v5, %v3396_v17 }
0x13c4   :  { %v3424_v10 = vsel %vm3423_vm7, %v3399_v13, %v3422_v1 }
0x13c5   :  { %v3427_v31 = vsel %vm3425_vm8, %v3426_v29, %v3424_v10  ;;  %v3417_v32 = vsel %vm3416_vm9, %v3396_v17, %v3415_v12 }
0x13c6   :  { %v3431_v34 = vmax.f32 %v3427_v31, 1e-12  ;;  %v3420_v35 = vsel %vm3418_vm10, %v3419_v30, %v3417_v32 }
0x13c7   :  { %v3430_v36 = vmax.f32 %v3420_v35, 1e-12 }
0x13c8   :  { %4969 = vrcp.f32 %v3431_v34 }
0x13c9   :  { %4971 = vrcp.f32 %v3430_v36 }
0x13cb   :  { %v4966_v37 = vpop.eup %4965 }
0x13cc   :  { %v4968_v40 = vpop.eup %4967  ;;  %v3437_v42 = vmul.f32 %v4966_v37, %v5771_v48 }
0x13cd   :  { %v3436_v41 = vmul.f32 %v4968_v40, %v5773_v49 }
0x13cf   :  { %4529 = vmatprep.mubr.msk.f32.mxu1 %vm55_vm0, %v3436_v41 }
0x13d0   :  { %4530 = vmatmul.mubr.msk.f32.vlgmr.msra.gmra.mrb[52].mxu1 %vm55_vm0, %v3437_v42 }
0x13d1   :  { %4832 = vmatpush3.bf16.msra.mxu1 %v4829_v18 }
0x13d2   :  { %v4970_v44 = vpop.eup %4969  ;;  %4834 = vmatprep.subr.bf16.mxu1 %v4833_v43 }
0x13d3   :  { %v4972_v45 = vpop.eup %4971  ;;  %v3439_v47 = vmul.f32 %v4970_v44, %v5781_v58 }
0x13d4   :  { %v3438_v46 = vmul.f32 %v4972_v45, %v5783_v59 }
0x13d5   :  { %4836 = vmatpush3.bf16.msra.mxu1 %v4833_v43 }
0x13d6   :  { %4532 = vmatprep.mubr.msk.f32.mxu1 %vm55_vm0, %v3438_v46 }
0x13d7   :  { %4533 = vmatmul.mubr.msk.f32.gmra.mrb[54].mxu1 %vm55_vm0, %v3439_v47 }
0x13d8   :  { %4543 = vmatprep.mubr.msk.f32.mxu1 %vm55_vm0, %v5773_v49 }
0x13db   :  { %4544 = vmatmul.mubr.msk.f32.vlgmr.msra.gmra.mrb[56].mxu1 %vm55_vm0, %v5771_v48 }
0x13dc   :  { %4546 = vmatprep.mubr.msk.f32.mxu1 %vm55_vm0, %v5783_v59 }
0x13df   :  { %4547 = vmatmul.mubr.msk.f32.gmra.mrb[58].mxu1 %vm55_vm0, %v5781_v58 }
0x14a3   :  { %v4531_v50 = vpop.f32.mrb[52].mxu1 }
0x14a4   :  { %3542 = vst [vmem:[%s5868_s13 + $0x8] sm:$0xff] %v4531_v50  ;;  %v3522_v51 = vpop.f32.mrb[53].mxu1 }
0x14a5   :  { %3541 = vst [vmem:[%s5868_s13] sm:$0xff] %v3522_v51 }
0x14aa   :  { %v4534_v49 = vpop.f32.mrb[54].mxu1 }
0x14ab   :  { %3544 = vst [vmem:[%s5868_s13 + $0x18] sm:$0xff] %v4534_v49  ;;  %v3532_v48 = vpop.f32.mrb[55].mxu1 }
0x14ac   :  { %3543 = vst [vmem:[%s5868_s13 + $0x10] sm:$0xff] %v3532_v48 }
0x14ae   :  { %v4545_v52 = vpop.f32.mrb[56].mxu1 }
0x14af   :  { %3647 = vst [vmem:[%s5869_s14 + $0x8] sm:$0xff] %v4545_v52  ;;  %v3627_v53 = vpop.f32.mrb[57].mxu1 }
0x14b0   :  { %3646 = vst [vmem:[%s5869_s14] sm:$0xff] %v3627_v53 }
0x14b2   :  { %v4548_v54 = vpop.f32.mrb[58].mxu1 }
0x14b3   :  { %3649 = vst [vmem:[%s5869_s14 + $0x18] sm:$0xff] %v4548_v54  ;;  %v3637_v55 = vpop.f32.mrb[59].mxu1 }
0x14b4   :  { %3648 = vst [vmem:[%s5869_s14 + $0x10] sm:$0xff] %v3637_v55 }

</bundles_post_ra>
